<compile_context>
chip_gen: v7x
topology: tpu7x:2x2x1
jax: 0.10.0
libtpu: 0.0.40
codegen_flags: <defaults>
</compile_context>

<pallas_src>
import functools

import jax
import jax.numpy as jnp
import numpy as np
from jax.experimental import pallas as pl
from jax.experimental.pallas import tpu as pltpu


def actor_kernel(x_ref, wi_ref, wh_ref, bi_ref, bhn_ref,
                 w1_ref, b1_ref, w2_ref, b2_ref, w3_ref, b3_ref,
                 out_ref, *, B, T):
    H = wh_ref.shape[0]

    # ---- 1) Input projections for ALL timesteps in one MXU pass ------------
    # x is (B*T, n_in), b-major rows (row b*T + t == x[b, t]).
    # bi already holds (b_ir + b_hr | b_iz + b_hz | b_in): the unconditional
    # hidden-side r/z biases were folded in at parameter-fusion time.
    xp = (jnp.dot(x_ref[...], wi_ref[...], preferred_element_type=jnp.float32)
          + bi_ref[...])                               # (B*T, 3H)
    # Pure vreg relabeling: (B*T, 3H) b-major -> (B, T, 3H), no data movement.
    xp = xp.reshape(B, T, 3 * H)

    # Loop-invariant hoists: read from VMEM once, reuse across the unrolled loop.
    wh = wh_ref[...]                                   # (H, 3H)
    bhn = bhn_ref[...]                                 # (1, H)

    # ---- 2) Serial GRU recurrence: only h @ W_h on the critical path -------
    # T is static and small -> fully unrolled with static indices; every h_t
    # stays register-resident (no VMEM scratch round trip).
    h = jnp.zeros((B, H), dtype=jnp.float32)
    hs = []
    for t in range(T):
        xi = xp[:, t, :]                               # (B, 3H), static slice
        hp = jnp.dot(h, wh, preferred_element_type=jnp.float32)   # (B, 3H)
        # PyTorch GRU cell semantics (gate order r, z, n):
        #   r = sigmoid(x W_ir + b_ir + h W_hr + b_hr)
        #   z = sigmoid(x W_iz + b_iz + h W_hz + b_hz)
        #   n = tanh(x W_in + b_in + r * (h W_hn + b_hn))
        #   h' = (1 - z) * n + z * h
        rz = jax.nn.sigmoid(xi[:, :2 * H] + hp[:, :2 * H])   # fused r|z sigmoid
        r = rz[:, :H]
        z = rz[:, H:]
        n = jnp.tanh(xi[:, 2 * H:] + r * (hp[:, 2 * H:] + bhn))
        h = (1.0 - z) * n + z * h
        hs.append(h)

    # ---- 3) MLP head applied once over all B*T rows -------------------------
    # Stack register-resident h_t's -> (B, T, H) -> (B*T, H) b-major rows
    # (same row order as the input, so the output reshape in the wrapper is free).
    h_flat = jnp.stack(hs, axis=1).reshape(B * T, H)
    f1 = jax.nn.relu(
        jnp.dot(h_flat, w1_ref[...], preferred_element_type=jnp.float32) + b1_ref[...])
    f2 = jax.nn.relu(
        jnp.dot(f1, w2_ref[...], preferred_element_type=jnp.float32) + b2_ref[...])
    out_ref[...] = (
        jnp.dot(f2, w3_ref[...], preferred_element_type=jnp.float32) + b3_ref[...])


def fuse_actor_params(params):
    """Precompute fused GRU gate weights/biases ONCE (static per model).

    Gate order is (r, z, n). The hidden-side r/z biases are added
    unconditionally, so they are folded into the input-side bias that is added
    in the hoisted input projection. The n-gate hidden bias (b_hn) must stay
    inside the r * (...) term, so it is kept separate and added per step.
    """
    return {
        'wi': jnp.concatenate([params['wr_i'], params['wz_i'], params['wn_i']], axis=1),
        'wh': jnp.concatenate([params['wr_h'], params['wz_h'], params['wn_h']], axis=1),
        'bi': jnp.concatenate([params['b_ir'] + params['b_hr'],
                               params['b_iz'] + params['b_hz'],
                               params['b_in']], axis=1),
        'bhn': params['b_hn'],
        'w1': params['w1'], 'b1': params['b1'],
        'w2': params['w2'], 'b2': params['b2'],
        'w3': params['w3'], 'b3': params['b3'],
    }


@jax.jit
def actor_forward(state, fused):
    """state: (B, T, n_input) batch-first; returns (B, T, n_output) float32."""
    x = state.astype(jnp.float32)
    B, T, n_in = x.shape
    n_out = fused['w3'].shape[1]

    # Free metadata reshape on the contiguous batch-first array: row b*T+t = x[b,t].
    x2d = x.reshape(B * T, n_in)

    vmem = pl.BlockSpec(memory_space=pltpu.MemorySpace.VMEM)
    out2d = pl.pallas_call(
        functools.partial(actor_kernel, B=B, T=T),
        out_shape=jax.ShapeDtypeStruct((B * T, n_out), jnp.float32),
        in_specs=[vmem] * 11,
        out_specs=vmem,
    )(x2d, fused['wi'], fused['wh'], fused['bi'], fused['bhn'],
      fused['w1'], fused['b1'], fused['w2'], fused['b2'],
      fused['w3'], fused['b3'])
    # Free reshape back to batch-first 3D (same b-major row order).
    return out2d.reshape(B, T, n_out)


def reference_forward(state, params):
    """Pure-JAX reference with identical semantics (lax.scan GRU, unfused)."""
    x = state.astype(jnp.float32)
    B = x.shape[0]
    H = params['wr_h'].shape[0]
    h0 = jnp.zeros((B, H), jnp.float32)

    def step(h, xt):
        r = jax.nn.sigmoid(xt @ params['wr_i'] + params['b_ir']
                           + h @ params['wr_h'] + params['b_hr'])
        z = jax.nn.sigmoid(xt @ params['wz_i'] + params['b_iz']
                           + h @ params['wz_h'] + params['b_hz'])
        n = jnp.tanh(xt @ params['wn_i'] + params['b_in']
                     + r * (h @ params['wn_h'] + params['b_hn']))
        h_new = (1.0 - z) * n + z * h
        return h_new, h_new

    _, hs = jax.lax.scan(step, h0, jnp.transpose(x, (1, 0, 2)))
    gru_out = jnp.transpose(hs, (1, 0, 2))
    f1 = jax.nn.relu(gru_out @ params['w1'] + params['b1'])
    f2 = jax.nn.relu(f1 @ params['w2'] + params['b2'])
    return f2 @ params['w3'] + params['b3']


def init_params(key, n_input, hidden_size, n_features, n_output):
    """Deterministic parameter init mimicking PyTorch scales.

    GRU: uniform(-1/sqrt(H), 1/sqrt(H)) for all weights/biases (b_ih, b_hh kept
    separate so the n-gate bias placement matches PyTorch exactly).
    Linear: xavier_uniform weights (relu gain for h1/h2, linear gain for h3),
            uniform(-1/sqrt(fan_in), 1/sqrt(fan_in)) biases.
    Weights are stored transposed as (in, out) so the kernel computes x @ W.
    """
    keys = jax.random.split(key, 24)
    ki = iter(keys)
    kg = 1.0 / np.sqrt(hidden_size)

    def u(k, shape, bound):
        return jax.random.uniform(k, shape, jnp.float32, -bound, bound)

    def xavier(k, fan_in, fan_out, gain):
        bound = gain * np.sqrt(6.0 / (fan_in + fan_out))
        return jax.random.uniform(k, (fan_in, fan_out), jnp.float32, -bound, bound)

    relu_gain = np.sqrt(2.0)
    return {
        # GRU input->hidden weights (stored as (n_in, H))
        'wr_i': u(next(ki), (n_input, hidden_size), kg),
        'wz_i': u(next(ki), (n_input, hidden_size), kg),
        'wn_i': u(next(ki), (n_input, hidden_size), kg),
        # GRU hidden->hidden weights (stored as (H, H))
        'wr_h': u(next(ki), (hidden_size, hidden_size), kg),
        'wz_h': u(next(ki), (hidden_size, hidden_size), kg),
        'wn_h': u(next(ki), (hidden_size, hidden_size), kg),
        # GRU biases (input-side and hidden-side kept separate)
        'b_ir': u(next(ki), (1, hidden_size), kg),
        'b_iz': u(next(ki), (1, hidden_size), kg),
        'b_in': u(next(ki), (1, hidden_size), kg),
        'b_hr': u(next(ki), (1, hidden_size), kg),
        'b_hz': u(next(ki), (1, hidden_size), kg),
        'b_hn': u(next(ki), (1, hidden_size), kg),
        # MLP head (weights stored transposed: (in, out))
        'w1': xavier(next(ki), hidden_size, n_features, relu_gain),
        'b1': u(next(ki), (1, n_features), 1.0 / np.sqrt(hidden_size)),
        'w2': xavier(next(ki), n_features, n_features, relu_gain),
        'b2': u(next(ki), (1, n_features), 1.0 / np.sqrt(n_features)),
        'w3': xavier(next(ki), n_features, n_output, 1.0),
        'b3': u(next(ki), (1, n_output), 1.0 / np.sqrt(n_features)),
    }


if __name__ == "__main__":
    # Small shapes consistent with ActorNetwork:
    #   input_shape = (T, n_input) -> n_input = 16
    #   output_shape = (n_output,) -> n_output = 8
    #   n_features = 32, hidden_size = 32, batch = 2, seq = 8
    B, T, N_IN, H, N_FEAT, N_OUT = 2, 8, 16, 32, 32, 8

    key = jax.random.PRNGKey(0)
    k_param, k_x = jax.random.split(key)
    params = init_params(k_param, N_IN, H, N_FEAT, N_OUT)
    fused = fuse_actor_params(params)   # computed once per model, not per call
    state = jax.random.normal(k_x, (B, T, N_IN), dtype=jnp.float32)

    out = jax.block_until_ready(actor_forward(state, fused))

    ref = jax.block_until_ready(reference_forward(state, params))
    np.testing.assert_allclose(np.asarray(out), np.asarray(ref),
                               rtol=1e-5, atol=1e-5)
    assert out.shape == (B, T, N_OUT)

    print("KERNEL_OK")
</pallas_src>

<mosaic_0001>
module attributes {stable_mosaic.version = 11 : i64} {
  func.func @actor_kernel(%arg0: memref<16x16xf32, #tpu.memory_space<vmem>>, %arg1: memref<16x96xf32, #tpu.memory_space<vmem>>, %arg2: memref<32x96xf32, #tpu.memory_space<vmem>>, %arg3: memref<1x96xf32, #tpu.memory_space<vmem>>, %arg4: memref<1x32xf32, #tpu.memory_space<vmem>>, %arg5: memref<32x32xf32, #tpu.memory_space<vmem>>, %arg6: memref<1x32xf32, #tpu.memory_space<vmem>>, %arg7: memref<32x32xf32, #tpu.memory_space<vmem>>, %arg8: memref<1x32xf32, #tpu.memory_space<vmem>>, %arg9: memref<32x8xf32, #tpu.memory_space<vmem>>, %arg10: memref<1x8xf32, #tpu.memory_space<vmem>>, %arg11: memref<16x8xf32, #tpu.memory_space<vmem>>) attributes {dimension_semantics = [], scalar_prefetch = 0 : i64, scratch_operands = 0 : i64, tpu.core_type = #tpu.core_type<tc>} {
    %c0 = arith.constant 0 : index
    %c0_0 = arith.constant 0 : index
    %0 = vector.load %arg0[%c0, %c0_0] : memref<16x16xf32, #tpu.memory_space<vmem>>, vector<16x16xf32>
    %c0_1 = arith.constant 0 : index
    %c0_2 = arith.constant 0 : index
    %1 = vector.load %arg1[%c0_1, %c0_2] : memref<16x96xf32, #tpu.memory_space<vmem>>, vector<16x96xf32>
    %cst = arith.constant dense<0.000000e+00> : vector<16x96xf32>
    %2 = tpu.matmul %0, %1, %cst {dimension_numbers = #tpu.dot_dimension_numbers<[1], [0], [0], [1], [0, 0, 1, 1], [], []>} : vector<16x16xf32>, vector<16x96xf32>, vector<16x96xf32> -> vector<16x96xf32>
    %c0_3 = arith.constant 0 : index
    %c0_4 = arith.constant 0 : index
    %3 = vector.load %arg3[%c0_3, %c0_4] : memref<1x96xf32, #tpu.memory_space<vmem>>, vector<1x96xf32>
    %4 = vector.broadcast %3 : vector<1x96xf32> to vector<16x96xf32>
    %5 = arith.addf %2, %4 : vector<16x96xf32>
    %6 = vector.shape_cast %5 : vector<16x96xf32> to vector<2x8x96xf32>
    %c0_5 = arith.constant 0 : index
    %c0_6 = arith.constant 0 : index
    %7 = vector.load %arg2[%c0_5, %c0_6] : memref<32x96xf32, #tpu.memory_space<vmem>>, vector<32x96xf32>
    %c0_7 = arith.constant 0 : index
    %c0_8 = arith.constant 0 : index
    %8 = vector.load %arg4[%c0_7, %c0_8] : memref<1x32xf32, #tpu.memory_space<vmem>>, vector<1x32xf32>
    %cst_9 = arith.constant 0.000000e+00 : f32
    %9 = vector.broadcast %cst_9 : f32 to vector<2x32xf32>
    %10 = vector.extract_strided_slice %6 {offsets = [0, 0, 0], sizes = [2, 1, 96], strides = [1, 1, 1]} : vector<2x8x96xf32> to vector<2x1x96xf32>
    %11 = vector.shape_cast %10 : vector<2x1x96xf32> to vector<2x96xf32>
    %cst_10 = arith.constant dense<0.000000e+00> : vector<2x96xf32>
    %12 = tpu.matmul %9, %7, %cst_10 {dimension_numbers = #tpu.dot_dimension_numbers<[1], [0], [0], [1], [0, 0, 1, 1], [], []>} : vector<2x32xf32>, vector<32x96xf32>, vector<2x96xf32> -> vector<2x96xf32>
    %13 = vector.extract_strided_slice %11 {offsets = [0, 0], sizes = [2, 64], strides = [1, 1]} : vector<2x96xf32> to vector<2x64xf32>
    %14 = vector.extract_strided_slice %12 {offsets = [0, 0], sizes = [2, 64], strides = [1, 1]} : vector<2x96xf32> to vector<2x64xf32>
    %15 = arith.addf %13, %14 : vector<2x64xf32>
    %16 = arith.negf %15 : vector<2x64xf32>
    %17 = math.exp %16 : vector<2x64xf32>
    %cst_11 = arith.constant 1.000000e+00 : f32
    %18 = vector.broadcast %cst_11 : f32 to vector<2x64xf32>
    %19 = arith.addf %18, %17 : vector<2x64xf32>
    %20 = arith.divf %18, %19 : vector<2x64xf32>
    %21 = vector.extract_strided_slice %20 {offsets = [0, 0], sizes = [2, 32], strides = [1, 1]} : vector<2x64xf32> to vector<2x32xf32>
    %22 = vector.extract_strided_slice %20 {offsets = [0, 32], sizes = [2, 32], strides = [1, 1]} : vector<2x64xf32> to vector<2x32xf32>
    %23 = vector.extract_strided_slice %11 {offsets = [0, 64], sizes = [2, 32], strides = [1, 1]} : vector<2x96xf32> to vector<2x32xf32>
    %24 = vector.extract_strided_slice %12 {offsets = [0, 64], sizes = [2, 32], strides = [1, 1]} : vector<2x96xf32> to vector<2x32xf32>
    %25 = vector.broadcast %8 : vector<1x32xf32> to vector<2x32xf32>
    %26 = arith.addf %24, %25 : vector<2x32xf32>
    %27 = arith.mulf %21, %26 : vector<2x32xf32>
    %28 = arith.addf %23, %27 : vector<2x32xf32>
    %29 = math.tanh %28 : vector<2x32xf32>
    %cst_12 = arith.constant 1.000000e+00 : f32
    %30 = vector.broadcast %cst_12 : f32 to vector<2x32xf32>
    %31 = arith.subf %30, %22 : vector<2x32xf32>
    %32 = arith.mulf %31, %29 : vector<2x32xf32>
    %33 = arith.mulf %22, %9 : vector<2x32xf32>
    %34 = arith.addf %32, %33 : vector<2x32xf32>
    %35 = vector.extract_strided_slice %6 {offsets = [0, 1, 0], sizes = [2, 1, 96], strides = [1, 1, 1]} : vector<2x8x96xf32> to vector<2x1x96xf32>
    %36 = vector.shape_cast %35 : vector<2x1x96xf32> to vector<2x96xf32>
    %cst_13 = arith.constant dense<0.000000e+00> : vector<2x96xf32>
    %37 = tpu.matmul %34, %7, %cst_13 {dimension_numbers = #tpu.dot_dimension_numbers<[1], [0], [0], [1], [0, 0, 1, 1], [], []>} : vector<2x32xf32>, vector<32x96xf32>, vector<2x96xf32> -> vector<2x96xf32>
    %38 = vector.extract_strided_slice %36 {offsets = [0, 0], sizes = [2, 64], strides = [1, 1]} : vector<2x96xf32> to vector<2x64xf32>
    %39 = vector.extract_strided_slice %37 {offsets = [0, 0], sizes = [2, 64], strides = [1, 1]} : vector<2x96xf32> to vector<2x64xf32>
    %40 = arith.addf %38, %39 : vector<2x64xf32>
    %41 = arith.negf %40 : vector<2x64xf32>
    %42 = math.exp %41 : vector<2x64xf32>
    %cst_14 = arith.constant 1.000000e+00 : f32
    %43 = vector.broadcast %cst_14 : f32 to vector<2x64xf32>
    %44 = arith.addf %43, %42 : vector<2x64xf32>
    %45 = arith.divf %43, %44 : vector<2x64xf32>
    %46 = vector.extract_strided_slice %45 {offsets = [0, 0], sizes = [2, 32], strides = [1, 1]} : vector<2x64xf32> to vector<2x32xf32>
    %47 = vector.extract_strided_slice %45 {offsets = [0, 32], sizes = [2, 32], strides = [1, 1]} : vector<2x64xf32> to vector<2x32xf32>
    %48 = vector.extract_strided_slice %36 {offsets = [0, 64], sizes = [2, 32], strides = [1, 1]} : vector<2x96xf32> to vector<2x32xf32>
    %49 = vector.extract_strided_slice %37 {offsets = [0, 64], sizes = [2, 32], strides = [1, 1]} : vector<2x96xf32> to vector<2x32xf32>
    %50 = vector.broadcast %8 : vector<1x32xf32> to vector<2x32xf32>
    %51 = arith.addf %49, %50 : vector<2x32xf32>
    %52 = arith.mulf %46, %51 : vector<2x32xf32>
    %53 = arith.addf %48, %52 : vector<2x32xf32>
    %54 = math.tanh %53 : vector<2x32xf32>
    %cst_15 = arith.constant 1.000000e+00 : f32
    %55 = vector.broadcast %cst_15 : f32 to vector<2x32xf32>
    %56 = arith.subf %55, %47 : vector<2x32xf32>
    %57 = arith.mulf %56, %54 : vector<2x32xf32>
    %58 = arith.mulf %47, %34 : vector<2x32xf32>
    %59 = arith.addf %57, %58 : vector<2x32xf32>
    %60 = vector.extract_strided_slice %6 {offsets = [0, 2, 0], sizes = [2, 1, 96], strides = [1, 1, 1]} : vector<2x8x96xf32> to vector<2x1x96xf32>
    %61 = vector.shape_cast %60 : vector<2x1x96xf32> to vector<2x96xf32>
    %cst_16 = arith.constant dense<0.000000e+00> : vector<2x96xf32>
    %62 = tpu.matmul %59, %7, %cst_16 {dimension_numbers = #tpu.dot_dimension_numbers<[1], [0], [0], [1], [0, 0, 1, 1], [], []>} : vector<2x32xf32>, vector<32x96xf32>, vector<2x96xf32> -> vector<2x96xf32>
    %63 = vector.extract_strided_slice %61 {offsets = [0, 0], sizes = [2, 64], strides = [1, 1]} : vector<2x96xf32> to vector<2x64xf32>
    %64 = vector.extract_strided_slice %62 {offsets = [0, 0], sizes = [2, 64], strides = [1, 1]} : vector<2x96xf32> to vector<2x64xf32>
    %65 = arith.addf %63, %64 : vector<2x64xf32>
    %66 = arith.negf %65 : vector<2x64xf32>
    %67 = math.exp %66 : vector<2x64xf32>
    %cst_17 = arith.constant 1.000000e+00 : f32
    %68 = vector.broadcast %cst_17 : f32 to vector<2x64xf32>
    %69 = arith.addf %68, %67 : vector<2x64xf32>
    %70 = arith.divf %68, %69 : vector<2x64xf32>
    %71 = vector.extract_strided_slice %70 {offsets = [0, 0], sizes = [2, 32], strides = [1, 1]} : vector<2x64xf32> to vector<2x32xf32>
    %72 = vector.extract_strided_slice %70 {offsets = [0, 32], sizes = [2, 32], strides = [1, 1]} : vector<2x64xf32> to vector<2x32xf32>
    %73 = vector.extract_strided_slice %61 {offsets = [0, 64], sizes = [2, 32], strides = [1, 1]} : vector<2x96xf32> to vector<2x32xf32>
    %74 = vector.extract_strided_slice %62 {offsets = [0, 64], sizes = [2, 32], strides = [1, 1]} : vector<2x96xf32> to vector<2x32xf32>
    %75 = vector.broadcast %8 : vector<1x32xf32> to vector<2x32xf32>
    %76 = arith.addf %74, %75 : vector<2x32xf32>
    %77 = arith.mulf %71, %76 : vector<2x32xf32>
    %78 = arith.addf %73, %77 : vector<2x32xf32>
    %79 = math.tanh %78 : vector<2x32xf32>
    %cst_18 = arith.constant 1.000000e+00 : f32
    %80 = vector.broadcast %cst_18 : f32 to vector<2x32xf32>
    %81 = arith.subf %80, %72 : vector<2x32xf32>
    %82 = arith.mulf %81, %79 : vector<2x32xf32>
    %83 = arith.mulf %72, %59 : vector<2x32xf32>
    %84 = arith.addf %82, %83 : vector<2x32xf32>
    %85 = vector.extract_strided_slice %6 {offsets = [0, 3, 0], sizes = [2, 1, 96], strides = [1, 1, 1]} : vector<2x8x96xf32> to vector<2x1x96xf32>
    %86 = vector.shape_cast %85 : vector<2x1x96xf32> to vector<2x96xf32>
    %cst_19 = arith.constant dense<0.000000e+00> : vector<2x96xf32>
    %87 = tpu.matmul %84, %7, %cst_19 {dimension_numbers = #tpu.dot_dimension_numbers<[1], [0], [0], [1], [0, 0, 1, 1], [], []>} : vector<2x32xf32>, vector<32x96xf32>, vector<2x96xf32> -> vector<2x96xf32>
    %88 = vector.extract_strided_slice %86 {offsets = [0, 0], sizes = [2, 64], strides = [1, 1]} : vector<2x96xf32> to vector<2x64xf32>
    %89 = vector.extract_strided_slice %87 {offsets = [0, 0], sizes = [2, 64], strides = [1, 1]} : vector<2x96xf32> to vector<2x64xf32>
    %90 = arith.addf %88, %89 : vector<2x64xf32>
    %91 = arith.negf %90 : vector<2x64xf32>
    %92 = math.exp %91 : vector<2x64xf32>
    %cst_20 = arith.constant 1.000000e+00 : f32
    %93 = vector.broadcast %cst_20 : f32 to vector<2x64xf32>
    %94 = arith.addf %93, %92 : vector<2x64xf32>
    %95 = arith.divf %93, %94 : vector<2x64xf32>
    %96 = vector.extract_strided_slice %95 {offsets = [0, 0], sizes = [2, 32], strides = [1, 1]} : vector<2x64xf32> to vector<2x32xf32>
    %97 = vector.extract_strided_slice %95 {offsets = [0, 32], sizes = [2, 32], strides = [1, 1]} : vector<2x64xf32> to vector<2x32xf32>
    %98 = vector.extract_strided_slice %86 {offsets = [0, 64], sizes = [2, 32], strides = [1, 1]} : vector<2x96xf32> to vector<2x32xf32>
    %99 = vector.extract_strided_slice %87 {offsets = [0, 64], sizes = [2, 32], strides = [1, 1]} : vector<2x96xf32> to vector<2x32xf32>
    %100 = vector.broadcast %8 : vector<1x32xf32> to vector<2x32xf32>
    %101 = arith.addf %99, %100 : vector<2x32xf32>
    %102 = arith.mulf %96, %101 : vector<2x32xf32>
    %103 = arith.addf %98, %102 : vector<2x32xf32>
    %104 = math.tanh %103 : vector<2x32xf32>
    %cst_21 = arith.constant 1.000000e+00 : f32
    %105 = vector.broadcast %cst_21 : f32 to vector<2x32xf32>
    %106 = arith.subf %105, %97 : vector<2x32xf32>
    %107 = arith.mulf %106, %104 : vector<2x32xf32>
    %108 = arith.mulf %97, %84 : vector<2x32xf32>
    %109 = arith.addf %107, %108 : vector<2x32xf32>
    %110 = vector.extract_strided_slice %6 {offsets = [0, 4, 0], sizes = [2, 1, 96], strides = [1, 1, 1]} : vector<2x8x96xf32> to vector<2x1x96xf32>
    %111 = vector.shape_cast %110 : vector<2x1x96xf32> to vector<2x96xf32>
    %cst_22 = arith.constant dense<0.000000e+00> : vector<2x96xf32>
    %112 = tpu.matmul %109, %7, %cst_22 {dimension_numbers = #tpu.dot_dimension_numbers<[1], [0], [0], [1], [0, 0, 1, 1], [], []>} : vector<2x32xf32>, vector<32x96xf32>, vector<2x96xf32> -> vector<2x96xf32>
    %113 = vector.extract_strided_slice %111 {offsets = [0, 0], sizes = [2, 64], strides = [1, 1]} : vector<2x96xf32> to vector<2x64xf32>
    %114 = vector.extract_strided_slice %112 {offsets = [0, 0], sizes = [2, 64], strides = [1, 1]} : vector<2x96xf32> to vector<2x64xf32>
    %115 = arith.addf %113, %114 : vector<2x64xf32>
    %116 = arith.negf %115 : vector<2x64xf32>
    %117 = math.exp %116 : vector<2x64xf32>
    %cst_23 = arith.constant 1.000000e+00 : f32
    %118 = vector.broadcast %cst_23 : f32 to vector<2x64xf32>
    %119 = arith.addf %118, %117 : vector<2x64xf32>
    %120 = arith.divf %118, %119 : vector<2x64xf32>
    %121 = vector.extract_strided_slice %120 {offsets = [0, 0], sizes = [2, 32], strides = [1, 1]} : vector<2x64xf32> to vector<2x32xf32>
    %122 = vector.extract_strided_slice %120 {offsets = [0, 32], sizes = [2, 32], strides = [1, 1]} : vector<2x64xf32> to vector<2x32xf32>
    %123 = vector.extract_strided_slice %111 {offsets = [0, 64], sizes = [2, 32], strides = [1, 1]} : vector<2x96xf32> to vector<2x32xf32>
    %124 = vector.extract_strided_slice %112 {offsets = [0, 64], sizes = [2, 32], strides = [1, 1]} : vector<2x96xf32> to vector<2x32xf32>
    %125 = vector.broadcast %8 : vector<1x32xf32> to vector<2x32xf32>
    %126 = arith.addf %124, %125 : vector<2x32xf32>
    %127 = arith.mulf %121, %126 : vector<2x32xf32>
    %128 = arith.addf %123, %127 : vector<2x32xf32>
    %129 = math.tanh %128 : vector<2x32xf32>
    %cst_24 = arith.constant 1.000000e+00 : f32
    %130 = vector.broadcast %cst_24 : f32 to vector<2x32xf32>
    %131 = arith.subf %130, %122 : vector<2x32xf32>
    %132 = arith.mulf %131, %129 : vector<2x32xf32>
    %133 = arith.mulf %122, %109 : vector<2x32xf32>
    %134 = arith.addf %132, %133 : vector<2x32xf32>
    %135 = vector.extract_strided_slice %6 {offsets = [0, 5, 0], sizes = [2, 1, 96], strides = [1, 1, 1]} : vector<2x8x96xf32> to vector<2x1x96xf32>
    %136 = vector.shape_cast %135 : vector<2x1x96xf32> to vector<2x96xf32>
    %cst_25 = arith.constant dense<0.000000e+00> : vector<2x96xf32>
    %137 = tpu.matmul %134, %7, %cst_25 {dimension_numbers = #tpu.dot_dimension_numbers<[1], [0], [0], [1], [0, 0, 1, 1], [], []>} : vector<2x32xf32>, vector<32x96xf32>, vector<2x96xf32> -> vector<2x96xf32>
    %138 = vector.extract_strided_slice %136 {offsets = [0, 0], sizes = [2, 64], strides = [1, 1]} : vector<2x96xf32> to vector<2x64xf32>
    %139 = vector.extract_strided_slice %137 {offsets = [0, 0], sizes = [2, 64], strides = [1, 1]} : vector<2x96xf32> to vector<2x64xf32>
    %140 = arith.addf %138, %139 : vector<2x64xf32>
    %141 = arith.negf %140 : vector<2x64xf32>
    %142 = math.exp %141 : vector<2x64xf32>
    %cst_26 = arith.constant 1.000000e+00 : f32
    %143 = vector.broadcast %cst_26 : f32 to vector<2x64xf32>
    %144 = arith.addf %143, %142 : vector<2x64xf32>
    %145 = arith.divf %143, %144 : vector<2x64xf32>
    %146 = vector.extract_strided_slice %145 {offsets = [0, 0], sizes = [2, 32], strides = [1, 1]} : vector<2x64xf32> to vector<2x32xf32>
    %147 = vector.extract_strided_slice %145 {offsets = [0, 32], sizes = [2, 32], strides = [1, 1]} : vector<2x64xf32> to vector<2x32xf32>
    %148 = vector.extract_strided_slice %136 {offsets = [0, 64], sizes = [2, 32], strides = [1, 1]} : vector<2x96xf32> to vector<2x32xf32>
    %149 = vector.extract_strided_slice %137 {offsets = [0, 64], sizes = [2, 32], strides = [1, 1]} : vector<2x96xf32> to vector<2x32xf32>
    %150 = vector.broadcast %8 : vector<1x32xf32> to vector<2x32xf32>
    %151 = arith.addf %149, %150 : vector<2x32xf32>
    %152 = arith.mulf %146, %151 : vector<2x32xf32>
    %153 = arith.addf %148, %152 : vector<2x32xf32>
    %154 = math.tanh %153 : vector<2x32xf32>
    %cst_27 = arith.constant 1.000000e+00 : f32
    %155 = vector.broadcast %cst_27 : f32 to vector<2x32xf32>
    %156 = arith.subf %155, %147 : vector<2x32xf32>
    %157 = arith.mulf %156, %154 : vector<2x32xf32>
    %158 = arith.mulf %147, %134 : vector<2x32xf32>
    %159 = arith.addf %157, %158 : vector<2x32xf32>
    %160 = vector.extract_strided_slice %6 {offsets = [0, 6, 0], sizes = [2, 1, 96], strides = [1, 1, 1]} : vector<2x8x96xf32> to vector<2x1x96xf32>
    %161 = vector.shape_cast %160 : vector<2x1x96xf32> to vector<2x96xf32>
    %cst_28 = arith.constant dense<0.000000e+00> : vector<2x96xf32>
    %162 = tpu.matmul %159, %7, %cst_28 {dimension_numbers = #tpu.dot_dimension_numbers<[1], [0], [0], [1], [0, 0, 1, 1], [], []>} : vector<2x32xf32>, vector<32x96xf32>, vector<2x96xf32> -> vector<2x96xf32>
    %163 = vector.extract_strided_slice %161 {offsets = [0, 0], sizes = [2, 64], strides = [1, 1]} : vector<2x96xf32> to vector<2x64xf32>
    %164 = vector.extract_strided_slice %162 {offsets = [0, 0], sizes = [2, 64], strides = [1, 1]} : vector<2x96xf32> to vector<2x64xf32>
    %165 = arith.addf %163, %164 : vector<2x64xf32>
    %166 = arith.negf %165 : vector<2x64xf32>
    %167 = math.exp %166 : vector<2x64xf32>
    %cst_29 = arith.constant 1.000000e+00 : f32
    %168 = vector.broadcast %cst_29 : f32 to vector<2x64xf32>
    %169 = arith.addf %168, %167 : vector<2x64xf32>
    %170 = arith.divf %168, %169 : vector<2x64xf32>
    %171 = vector.extract_strided_slice %170 {offsets = [0, 0], sizes = [2, 32], strides = [1, 1]} : vector<2x64xf32> to vector<2x32xf32>
    %172 = vector.extract_strided_slice %170 {offsets = [0, 32], sizes = [2, 32], strides = [1, 1]} : vector<2x64xf32> to vector<2x32xf32>
    %173 = vector.extract_strided_slice %161 {offsets = [0, 64], sizes = [2, 32], strides = [1, 1]} : vector<2x96xf32> to vector<2x32xf32>
    %174 = vector.extract_strided_slice %162 {offsets = [0, 64], sizes = [2, 32], strides = [1, 1]} : vector<2x96xf32> to vector<2x32xf32>
    %175 = vector.broadcast %8 : vector<1x32xf32> to vector<2x32xf32>
    %176 = arith.addf %174, %175 : vector<2x32xf32>
    %177 = arith.mulf %171, %176 : vector<2x32xf32>
    %178 = arith.addf %173, %177 : vector<2x32xf32>
    %179 = math.tanh %178 : vector<2x32xf32>
    %cst_30 = arith.constant 1.000000e+00 : f32
    %180 = vector.broadcast %cst_30 : f32 to vector<2x32xf32>
    %181 = arith.subf %180, %172 : vector<2x32xf32>
    %182 = arith.mulf %181, %179 : vector<2x32xf32>
    %183 = arith.mulf %172, %159 : vector<2x32xf32>
    %184 = arith.addf %182, %183 : vector<2x32xf32>
    %185 = vector.extract_strided_slice %6 {offsets = [0, 7, 0], sizes = [2, 1, 96], strides = [1, 1, 1]} : vector<2x8x96xf32> to vector<2x1x96xf32>
    %186 = vector.shape_cast %185 : vector<2x1x96xf32> to vector<2x96xf32>
    %cst_31 = arith.constant dense<0.000000e+00> : vector<2x96xf32>
    %187 = tpu.matmul %184, %7, %cst_31 {dimension_numbers = #tpu.dot_dimension_numbers<[1], [0], [0], [1], [0, 0, 1, 1], [], []>} : vector<2x32xf32>, vector<32x96xf32>, vector<2x96xf32> -> vector<2x96xf32>
    %188 = vector.extract_strided_slice %186 {offsets = [0, 0], sizes = [2, 64], strides = [1, 1]} : vector<2x96xf32> to vector<2x64xf32>
    %189 = vector.extract_strided_slice %187 {offsets = [0, 0], sizes = [2, 64], strides = [1, 1]} : vector<2x96xf32> to vector<2x64xf32>
    %190 = arith.addf %188, %189 : vector<2x64xf32>
    %191 = arith.negf %190 : vector<2x64xf32>
    %192 = math.exp %191 : vector<2x64xf32>
    %cst_32 = arith.constant 1.000000e+00 : f32
    %193 = vector.broadcast %cst_32 : f32 to vector<2x64xf32>
    %194 = arith.addf %193, %192 : vector<2x64xf32>
    %195 = arith.divf %193, %194 : vector<2x64xf32>
    %196 = vector.extract_strided_slice %195 {offsets = [0, 0], sizes = [2, 32], strides = [1, 1]} : vector<2x64xf32> to vector<2x32xf32>
    %197 = vector.extract_strided_slice %195 {offsets = [0, 32], sizes = [2, 32], strides = [1, 1]} : vector<2x64xf32> to vector<2x32xf32>
    %198 = vector.extract_strided_slice %186 {offsets = [0, 64], sizes = [2, 32], strides = [1, 1]} : vector<2x96xf32> to vector<2x32xf32>
    %199 = vector.extract_strided_slice %187 {offsets = [0, 64], sizes = [2, 32], strides = [1, 1]} : vector<2x96xf32> to vector<2x32xf32>
    %200 = vector.broadcast %8 : vector<1x32xf32> to vector<2x32xf32>
    %201 = arith.addf %199, %200 : vector<2x32xf32>
    %202 = arith.mulf %196, %201 : vector<2x32xf32>
    %203 = arith.addf %198, %202 : vector<2x32xf32>
    %204 = math.tanh %203 : vector<2x32xf32>
    %cst_33 = arith.constant 1.000000e+00 : f32
    %205 = vector.broadcast %cst_33 : f32 to vector<2x32xf32>
    %206 = arith.subf %205, %197 : vector<2x32xf32>
    %207 = arith.mulf %206, %204 : vector<2x32xf32>
    %208 = arith.mulf %197, %184 : vector<2x32xf32>
    %209 = arith.addf %207, %208 : vector<2x32xf32>
    %210 = vector.shape_cast %34 : vector<2x32xf32> to vector<2x1x32xf32>
    %211 = vector.shape_cast %59 : vector<2x32xf32> to vector<2x1x32xf32>
    %212 = vector.shape_cast %84 : vector<2x32xf32> to vector<2x1x32xf32>
    %213 = vector.shape_cast %109 : vector<2x32xf32> to vector<2x1x32xf32>
    %214 = vector.shape_cast %134 : vector<2x32xf32> to vector<2x1x32xf32>
    %215 = vector.shape_cast %159 : vector<2x32xf32> to vector<2x1x32xf32>
    %216 = vector.shape_cast %184 : vector<2x32xf32> to vector<2x1x32xf32>
    %217 = vector.shape_cast %209 : vector<2x32xf32> to vector<2x1x32xf32>
    %218 = tpu.concatenate %210, %211, %212, %213, %214, %215, %216, %217 in 1 : vector<2x1x32xf32>, vector<2x1x32xf32>, vector<2x1x32xf32>, vector<2x1x32xf32>, vector<2x1x32xf32>, vector<2x1x32xf32>, vector<2x1x32xf32>, vector<2x1x32xf32> -> vector<2x8x32xf32>
    %219 = vector.shape_cast %218 : vector<2x8x32xf32> to vector<16x32xf32>
    %c0_34 = arith.constant 0 : index
    %c0_35 = arith.constant 0 : index
    %220 = vector.load %arg5[%c0_34, %c0_35] : memref<32x32xf32, #tpu.memory_space<vmem>>, vector<32x32xf32>
    %cst_36 = arith.constant dense<0.000000e+00> : vector<16x32xf32>
    %221 = tpu.matmul %219, %220, %cst_36 {dimension_numbers = #tpu.dot_dimension_numbers<[1], [0], [0], [1], [0, 0, 1, 1], [], []>} : vector<16x32xf32>, vector<32x32xf32>, vector<16x32xf32> -> vector<16x32xf32>
    %c0_37 = arith.constant 0 : index
    %c0_38 = arith.constant 0 : index
    %222 = vector.load %arg6[%c0_37, %c0_38] : memref<1x32xf32, #tpu.memory_space<vmem>>, vector<1x32xf32>
    %223 = vector.broadcast %222 : vector<1x32xf32> to vector<16x32xf32>
    %224 = arith.addf %221, %223 : vector<16x32xf32>
    %cst_39 = arith.constant 0.000000e+00 : f32
    %225 = vector.broadcast %cst_39 : f32 to vector<16x32xf32>
    %226 = arith.maximumf %224, %225 : vector<16x32xf32>
    %c0_40 = arith.constant 0 : index
    %c0_41 = arith.constant 0 : index
    %227 = vector.load %arg7[%c0_40, %c0_41] : memref<32x32xf32, #tpu.memory_space<vmem>>, vector<32x32xf32>
    %cst_42 = arith.constant dense<0.000000e+00> : vector<16x32xf32>
    %228 = tpu.matmul %226, %227, %cst_42 {dimension_numbers = #tpu.dot_dimension_numbers<[1], [0], [0], [1], [0, 0, 1, 1], [], []>} : vector<16x32xf32>, vector<32x32xf32>, vector<16x32xf32> -> vector<16x32xf32>
    %c0_43 = arith.constant 0 : index
    %c0_44 = arith.constant 0 : index
    %229 = vector.load %arg8[%c0_43, %c0_44] : memref<1x32xf32, #tpu.memory_space<vmem>>, vector<1x32xf32>
    %230 = vector.broadcast %229 : vector<1x32xf32> to vector<16x32xf32>
    %231 = arith.addf %228, %230 : vector<16x32xf32>
    %cst_45 = arith.constant 0.000000e+00 : f32
    %232 = vector.broadcast %cst_45 : f32 to vector<16x32xf32>
    %233 = arith.maximumf %231, %232 : vector<16x32xf32>
    %c0_46 = arith.constant 0 : index
    %c0_47 = arith.constant 0 : index
    %234 = vector.load %arg9[%c0_46, %c0_47] : memref<32x8xf32, #tpu.memory_space<vmem>>, vector<32x8xf32>
    %cst_48 = arith.constant dense<0.000000e+00> : vector<16x8xf32>
    %235 = tpu.matmul %233, %234, %cst_48 {dimension_numbers = #tpu.dot_dimension_numbers<[1], [0], [0], [1], [0, 0, 1, 1], [], []>} : vector<16x32xf32>, vector<32x8xf32>, vector<16x8xf32> -> vector<16x8xf32>
    %c0_49 = arith.constant 0 : index
    %c0_50 = arith.constant 0 : index
    %236 = vector.load %arg10[%c0_49, %c0_50] : memref<1x8xf32, #tpu.memory_space<vmem>>, vector<1x8xf32>
    %237 = vector.broadcast %236 : vector<1x8xf32> to vector<16x8xf32>
    %238 = arith.addf %235, %237 : vector<16x8xf32>
    %c0_51 = arith.constant 0 : index
    %c0_52 = arith.constant 0 : index
    %239 = vector.load %arg11[%c0_51, %c0_52] : memref<16x8xf32, #tpu.memory_space<vmem>>, vector<16x8xf32>
    tpu.vector_store %arg11[%c0_51, %c0_52], %238 {strides = array<i32>} : memref<16x8xf32, #tpu.memory_space<vmem>>, vector<16x8xf32>,
    return
  }
}

</mosaic_0001>

<bundles_post_ra>
// kernel: actor_forward.1
= control target key start
LH: loop header
LB: loop body
LE: loop exit
PB: predicated region body
PF: predicated region fallthrough
CT: control target
= control target key end

     0   :  { %16 = vsyncpa [#allocation3], 0  ;;  %s2693_s0 = inlined_call_operand.hbm [shape: f32[16,16], index: 0, kind: input, shape index: {}]   ;;  %s2694_s1 = inlined_call_operand.vmem [shape: f32[16,96], index: 1, kind: input, shape index: {}]   ;;  %s2695_s2 = inlined_call_operand.vmem [shape: f32[32,96], index: 2, kind: input, shape index: {}]   ;;  %s2696_s3 = inlined_call_operand.vmem [shape: f32[1,96], index: 3, kind: input, shape index: {}]   ;;  %s2697_s4 = inlined_call_operand.hbm [shape: f32[1,32], index: 4, kind: input, shape index: {}]   ;;  %s2698_s5 = inlined_call_operand.vmem [shape: f32[32,32], index: 5, kind: input, shape index: {}]   ;;  %s2699_s6 = inlined_call_operand.hbm [shape: f32[1,32], index: 6, kind: input, shape index: {}]   ;;  %s2700_s7 = inlined_call_operand.hbm [shape: f32[32,32], index: 7, kind: input, shape index: {}]   ;;  %s2701_s8 = inlined_call_operand.hbm [shape: f32[1,32], index: 8, kind: input, shape index: {}]   ;;  %s2702_s9 = inlined_call_operand.vmem [shape: f32[32,8], index: 9, kind: input, shape index: {}]   ;;  %s2703_s10 = inlined_call_operand.hbm [shape: f32[1,8], index: 10, kind: input, shape index: {}]   ;;  %s2704_s11 = inlined_call_operand.hbm [shape: f32[16,8], index: 11, kind: output, shape index: {}]  }
   0x1   :  { %17 = vsyncpa [#allocation6], 0 }
   0x2   :  { %18 = vsyncpa [#allocation9], 0 }
   0x3   :  { %19 = vsyncpa [#allocation12], 0 }
   0x4   :  { %20 = vsyncpa [#allocation4], 0  ;;  %s2244_s17 = smov [#allocation5]   ;;  %s2080_s21 = scalar_lea.hbm %s2697_s4, 16 }
   0x5   :  { %s45_s18 = sshll.u32 %s2244_s17, 4  ;;  %p2081_p0 = scmp.ne.s32.totalorder %s2697_s4, %s2080_s21  ;;  %s46_s18 = int_to_ptr.vmem [resolvable:$true] %s45_s18 }
   0x6   :  { %p2084_p1 = scmp.lt.u32.totalorder %s2080_s21, %s2697_s4 }
   0x8   :  { %p2086_p2 = pnand %p2084_p1, %p2081_p0 }
   0xa   :  { %2089 = shalt.err (!%p2086_p2)
}
   0xb   :  { %s2090_s26 = scalar_lea.vmem %s46_s18, 16  ;;  %s2094_s27 = scalar_lea.vmem %s46_s18, 32 }
   0xc   :  { %p2091_p3 = scmp.ne.s32.totalorder %s46_s18, %s2090_s26  ;;  %p2095_p4 = scmp.lt.s32.totalorder %s46_s18, %s46_s18 }
   0xd   :  { %p2096_p5 = scmp.lt.s32.totalorder %s2094_s27, %s2090_s26 }
   0xf   :  { %p2097_p6 = por %p2096_p5, %p2095_p4 }
  0x11   :  { %p2098_p7 = pnand %p2097_p6, %p2091_p3 }
  0x13   :  { %2101 = shalt.err (!%p2098_p7)
}
  0x14   :  { %48 = dma.hbm_to_vmem [thread:$0]  %s2697_s4, 16, %s46_s18, [#allocation6]  }
  0x15   :  { %s2245_s30 = smov [#allocation8]   ;;  %s2246_s13 = smov [#allocation2]  }
  0x16   :  { %s66_s12 = sshll.u32 %s2245_s30, 4  ;;  %s26_s14 = sshll.u32 %s2246_s13, 4  ;;  %s67_s12 = int_to_ptr.vmem [resolvable:$true] %s66_s12  ;;  %s27_s14 = int_to_ptr.vmem [resolvable:$true] %s26_s14 }
  0x17   :  { %s2102_s17 = scalar_lea.hbm %s2700_s7, 512 }
  0x18   :  { %p2103_p8 = scmp.ne.s32.totalorder %s2700_s7, %s2102_s17  ;;  %p2106_p9 = scmp.lt.u32.totalorder %s2102_s17, %s2700_s7 }
  0x1a   :  { %p2108_p10 = pnand %p2106_p9, %p2103_p8 }
  0x1c   :  { %2111 = shalt.err (!%p2108_p10)
}
  0x1d   :  { %s2112_s4 = scalar_lea.vmem %s67_s12, 512  ;;  %p2117_p12 = scmp.lt.s32.totalorder %s67_s12, %s67_s12 }
  0x1e   :  { %p2113_p11 = scmp.ne.s32.totalorder %s67_s12, %s2112_s4  ;;  %p2118_p13 = scmp.lt.s32.totalorder %s2112_s4, %s2112_s4 }
  0x20   :  { %p2119_p0 = por %p2118_p13, %p2117_p12 }
  0x22   :  { %p2120_p1 = pnand %p2119_p0, %p2113_p11 }
  0x24   :  { %2123 = shalt.err (!%p2120_p1)
}
  0x25   :  { %s2247_s18 = smov 128   ;;  %s2248_s23 = smov 8  }
  0x26   :  { %72 = dma.hbm_to_vmem [thread:$0]  %s2700_s7, 512, %s67_s12, [#allocation9], %s2247_s18, %s2247_s18, %s2248_s23  }
  0x27   :  { %s2124_s28 = scalar_lea.hbm %s2693_s0, 256 }
  0x28   :  { %p2125_p2 = scmp.ne.s32.totalorder %s2693_s0, %s2124_s28  ;;  %p2128_p3 = scmp.lt.u32.totalorder %s2124_s28, %s2693_s0 }
  0x2a   :  { %p2130_p4 = pnand %p2128_p3, %p2125_p2 }
  0x2c   :  { %2133 = shalt.err (!%p2130_p4)
}
  0x2d   :  { %s2134_s16 = scalar_lea.vmem %s27_s14, 256  ;;  %p2139_p6 = scmp.lt.s32.totalorder %s27_s14, %s27_s14 }
  0x2e   :  { %p2135_p5 = scmp.ne.s32.totalorder %s27_s14, %s2134_s16  ;;  %p2140_p7 = scmp.lt.s32.totalorder %s2134_s16, %s2134_s16 }
  0x30   :  { %p2141_p8 = por %p2140_p7, %p2139_p6 }
  0x32   :  { %p2142_p9 = pnand %p2141_p8, %p2135_p5 }
  0x34   :  { %2145 = shalt.err (!%p2142_p9)
}
  0x35   :  { %32 = dma.hbm_to_vmem [thread:$0]  %s2693_s0, 256, %s27_s14, [#allocation3], %s2247_s18, %s2247_s18, %s2248_s23  }
  0x36   :  { %s2249_s17 = smov [#allocation7]   ;;  %s2250_s20 = smov [#allocation10]  }
  0x37   :  { %s57_s19 = sshll.u32 %s2249_s17, 4  ;;  %s79_s21 = sshll.u32 %s2250_s20, 4  ;;  %s58_s19 = int_to_ptr.vmem [resolvable:$true] %s57_s19  ;;  %s80_s21 = int_to_ptr.vmem [resolvable:$true] %s79_s21 }
  0x38   :  { %s2146_s24 = scalar_lea.hbm %s2699_s6, 16 }
  0x39   :  { %p2147_p10 = scmp.ne.s32.totalorder %s2699_s6, %s2146_s24  ;;  %p2150_p11 = scmp.lt.u32.totalorder %s2146_s24, %s2699_s6 }
  0x3b   :  { %p2152_p12 = pnand %p2150_p11, %p2147_p10 }
  0x3d   :  { %2155 = shalt.err (!%p2152_p12)
}
  0x3e   :  { %s2156_s0 = scalar_lea.vmem %s58_s19, 16  ;;  %s2160_s14 = scalar_lea.vmem %s58_s19, 32 }
  0x3f   :  { %p2157_p13 = scmp.ne.s32.totalorder %s58_s19, %s2156_s0  ;;  %p2161_p0 = scmp.lt.s32.totalorder %s58_s19, %s58_s19 }
  0x40   :  { %p2162_p1 = scmp.lt.s32.totalorder %s2160_s14, %s2156_s0 }
  0x42   :  { %p2163_p2 = por %p2162_p1, %p2161_p0 }
  0x44   :  { %p2164_p3 = pnand %p2163_p2, %p2157_p13 }
  0x46   :  { %2167 = shalt.err (!%p2164_p3)
}
  0x47   :  { %60 = dma.hbm_to_vmem [thread:$0]  %s2699_s6, 16, %s58_s19, [#allocation6]  }
  0x48   :  { %s2168_s16 = scalar_lea.hbm %s2701_s8, 16 }
  0x49   :  { %p2169_p4 = scmp.ne.s32.totalorder %s2701_s8, %s2168_s16  ;;  %p2172_p5 = scmp.lt.u32.totalorder %s2168_s16, %s2701_s8 }
  0x4b   :  { %p2174_p6 = pnand %p2172_p5, %p2169_p4 }
  0x4d   :  { %2177 = shalt.err (!%p2174_p6)
}
  0x4e   :  { %s2178_s22 = scalar_lea.vmem %s80_s21, 16  ;;  %s2182_s4 = scalar_lea.vmem %s80_s21, 32 }
  0x4f   :  { %p2179_p7 = scmp.ne.s32.totalorder %s80_s21, %s2178_s22  ;;  %p2183_p8 = scmp.lt.s32.totalorder %s80_s21, %s80_s21 }
  0x50   :  { %p2184_p9 = scmp.lt.s32.totalorder %s2182_s4, %s2178_s22 }
  0x52   :  { %p2185_p10 = por %p2184_p9, %p2183_p8 }
  0x54   :  { %p2186_p11 = pnand %p2185_p10, %p2179_p7 }
  0x56   :  { %2189 = shalt.err (!%p2186_p11)
}
  0x57   :  { %82 = dma.hbm_to_vmem [thread:$0]  %s2701_s8, 16, %s80_s21, [#allocation9]  }
  0x58   :  { %s2251_s24 = smov [#allocation11]   ;;  %s2190_s28 = scalar_lea.hbm %s2703_s10, 16 }
  0x59   :  { %s91_s25 = sshll.u32 %s2251_s24, 4  ;;  %p2191_p12 = scmp.ne.s32.totalorder %s2703_s10, %s2190_s28  ;;  %s92_s25 = int_to_ptr.vmem [resolvable:$true] %s91_s25 }
  0x5a   :  { %p2194_p13 = scmp.lt.u32.totalorder %s2190_s28, %s2703_s10 }
  0x5c   :  { %p2196_p0 = pnand %p2194_p13, %p2191_p12 }
  0x5e   :  { %2199 = shalt.err (!%p2196_p0)
}
  0x5f   :  { %s2200_s13 = scalar_lea.vmem %s92_s25, 16  ;;  %s2204_s8 = scalar_lea.vmem %s92_s25, 32 }
  0x60   :  { %p2201_p1 = scmp.ne.s32.totalorder %s92_s25, %s2200_s13  ;;  %p2205_p2 = scmp.lt.s32.totalorder %s92_s25, %s92_s25 }
  0x61   :  { %p2206_p3 = scmp.lt.s32.totalorder %s2204_s8, %s2200_s13 }
  0x63   :  { %p2207_p4 = por %p2206_p3, %p2205_p2 }
  0x65   :  { %p2208_p5 = pnand %p2207_p4, %p2201_p1 }
  0x67   :  { %2211 = shalt.err (!%p2208_p5)
}
  0x68   :  { %94 = dma.hbm_to_vmem [thread:$0]  %s2703_s10, 16, %s92_s25, [#allocation12]  }
  0x69   :  { %2234 = dma.done.wait [#allocation3], 256  }
  0x6a   :  { %2235 = vsyncadd [#allocation3], 4294967040 }
  0x6b   :  { %2236 = dma.done.wait [#allocation6], 32  }
  0x6c   :  { %2237 = vsyncadd [#allocation6], 4294967264 }
  0x6d   :  { %2238 = dma.done.wait [#allocation9], 528  }
  0x6e   :  { %2239 = vsyncadd [#allocation9], 4294966768 }
  0x6f   :  { %2240 = dma.done.wait [#allocation12], 16  }
  0x70   :  { %2241 = vsyncadd [#allocation12], 4294967280  ;;  %v2252_v0 = vmov 0.0|0.0   ;;  %vm2253_vm0 = vmmov 0   ;;  %v2254_v1 = vmov 0.0   ;;  %vm124_vm1 = vcmask 130048  }
  0x71   :  { %1898 = vmatprep.subr.bf16.mxu1 %v2252_v0  ;;  %1781 = vmatprep.mubr.msk.f32.mxu1 %vm2253_vm0, %v2254_v1  ;;  %v115_v2 = vld [vmem:[%s2694_s1] sm:$0xff]  ;;  %v116_v3 = vld [vmem:[%s2694_s1 + $0x8] sm:$0xff]  ;;  %v208_v9 = vld [vmem:[%s2695_s2 + $0x10] sm:$0xff]  ;;  %s2255_s25 = smov 64   ;;  %vm353_vm2 = vcmask 1041409   ;;  %vm211_vm3 = vcmask 261120  }
  0x72   :  { %v206_v4 = vld [vmem:[%s2695_s2] sm:$0xff]  ;;  %v1894_v5 = vpack.c.bf16 %v116_v3, %v115_v2  ;;  %v207_v6 = vld [vmem:[%s2695_s2 + $0x8] sm:$0xff]  ;;  %v209_v10 = vld [vmem:[%s2695_s2 + $0x18] sm:$0xff]  ;;  %vm1340_vm4 = vcmask 1040384   ;;  %vm1343_vm5 = vcmask 1041408   ;;  %vm1346_vm6 = vcmask 1042432  }
  0x73   :  { %v113_v7 = vld [vmem:[#allocation2] sm:$0xff]  ;;  %v2411_v8 = vpack.c.bf16 %v207_v6, %v206_v4  ;;  %v1673_v11 = vld [vmem:[#allocation5] ss:$0 sm:$0xff]  ;;  %v114_v12 = vld [vmem:[#allocation2 + $0x8] sm:$0xff]  ;;  %v2422_v13 = vpack.c.bf16 %v209_v10, %v208_v9  ;;  %vm1349_vm7 = vcmask 1043456   ;;  %vm1352_vm8 = vcmask 1044480  }
  0x74   :  { %1770 = vmatprep.mubr.msk.f32.mxu0 %vm124_vm1, %v113_v7  ;;  %1895 = vmatprep.subr.bf16.mxu0 %v1894_v5  ;;  %v1668_v21 = vld [vmem:[%s2696_s3] ss:$0 sm:$0xff]  ;;  %s2256_s3 = smov 96   ;;  %vm1355_vm9 = vcmask 1045504   ;;  %vm1358_vm10 = vcmask 1046528   ;;  %s2257_s20 = smov [#allocation13]  }
  0x75   :  { %308 = vrot.lane.b32.xlu0 %v1673_v11, %s2255_s25  ;;  %1900 = vmatpush3.bf16.msra.mxu1 %v2411_v8  ;;  %s1653_s22 = sshll.u32 %s2257_s20, 4  ;;  %vm1645_vm11 = vcmask 64512   ;;  %s1654_s22 = int_to_ptr.vmem [resolvable:$true] %s1653_s22 }
  0x76   :  { %1897 = vmatpush3.bf16.msra.mxu0 %v1894_v5  ;;  %1901 = vmatprep.subr.bf16.mxu1 %v2252_v0  ;;  %p2217_p7 = scmp.lt.s32.totalorder %s1654_s22, %s1654_s22 }
  0x77   :  { %1904 = vmatprep.subr.bf16.mxu0 %v2252_v0 }
  0x79   :  { %1771 = vmatmul.mubr.msk.f32.vlgmr.msra.gmra.mrb[0].mxu0 %vm124_vm1, %v114_v12  ;;  %1903 = vmatpush3.bf16.msra.mxu1 %v2422_v13 }
  0x7a   :  { %1906 = vmatpush3.bf16.msra.mxu0 %v2411_v8  ;;  %1792 = vmatprep.mubr.msk.f32.mxu0 %vm2253_vm0, %v2254_v1 }
  0x7b   :  { %1907 = vmatprep.subr.bf16.mxu0 %v2252_v0  ;;  %1910 = vmatprep.subr.bf16.mxu1 %v2252_v0 }
  0x7c   :  { %1782 = vmatmul.mubr.f32.vlgmr.msra.gmra.mrb[0].mxu1 %v2254_v1 }
  0x7d   :  { %1912 = vmatpush3.bf16.msra.mxu1 %v2411_v8  ;;  %1803 = vmatprep.mubr.msk.f32.mxu1 %vm2253_vm0, %v2254_v1 }
  0x7e   :  { %1909 = vmatpush3.bf16.msra.mxu0 %v2422_v13  ;;  %1913 = vmatprep.subr.bf16.mxu1 %v2252_v0 }
  0x7f   :  { %1916 = vmatprep.subr.bf16.mxu0 %v2252_v0 }
  0x81   :  { %1915 = vmatpush3.bf16.msra.mxu1 %v2422_v13 }
  0x82   :  { %1922 = vmatprep.subr.bf16.mxu1 %v2252_v0 }
  0xe7   :  { %v2442_v16 = vpop.permute.xlu0 %308 }
 0x14c   :  { %v1772_v14 = vpop.f32.mrb[0].mxu0 }
 0x14d   :  { %v197_v15 = vpop.f32.mrb[1].mxu0  ;;  %v2452_v23 = vadd.f32 %v1772_v14, %v1668_v21 }
 0x14e   :  { %v2450_v22 = vadd.f32 %v1668_v21, %v197_v15 }
 0x14f   :  { %v281_v17 = vpop.f32.mrb[0].mxu1 }
 0x150   :  { %v1783_v18 = vpop.f32.mrb[1].mxu1  ;;  %v311_v19 = vadd.f32 %v2442_v16, %v281_v17  ;;  %v286_v24 = vrot.slane %v281_v17, 1  ;;  %v289_v25 = vadd.f32 %v281_v17, %v2450_v22 }
 0x152   :  { %314 = vrot.lane.b32.xlu1 %v311_v19, %s2255_s25  ;;  %v313_v20 = vrot.slane %v311_v19, 1  ;;  %v290_v26 = vadd.f32 %v286_v24, %v2452_v23  ;;  %v1671_v27 = vmul.f32 -1.442695, %v289_v25 }
 0x154   :  { %316 = vrot.lane.b32.xlu0 %v313_v20, %s2255_s25  ;;  %v1672_v28 = vmul.f32 -1.442695, %v290_v26  ;;  %1984 = vpow2.f32 %v1671_v27 }
 0x156   :  { %1986 = vpow2.f32 %v1672_v28 }
 0x15e   :  { %v1985_v29 = vpop.eup %1984 }
 0x15f   :  { %v297_v31 = vadd.f32 1.0, %v1985_v29 }
 0x160   :  { %v1987_v30 = vpop.eup %1986 }
 0x161   :  { %v298_v32 = vadd.f32 1.0, %v1987_v30  ;;  %1988 = vrcp.f32 %v297_v31 }
 0x163   :  { %1990 = vrcp.f32 %v298_v32 }
 0x16b   :  { %v1989_v33 = vpop.eup %1988 }
 0x16c   :  { %v334_v46 = vsub.f32 1.0, %v1989_v33  ;;  %v346_v52 = vmul.f32 0.0, %v1989_v33 }
 0x16d   :  { %v1991_v36 = vpop.eup %1990 }
 0x16e   :  { %v335_v47 = vsub.f32 1.0, %v1991_v36  ;;  %v347_v50 = vmul.f32 0.0, %v1991_v36 }
 0x1c4   :  { %v315_v34 = vpop.permute.xlu1 %314 }
 0x1c5   :  { %v320_v35 = vmul.f32 %v1989_v33, %v315_v34 }
 0x1c6   :  { %v317_v37 = vpop.permute.xlu0 %316 }
 0x1c7   :  { %v321_v38 = vmul.f32 %v1991_v36, %v317_v37  ;;  %324 = vrot.lane.b32.xlu0 %v320_v35, %s2255_s25 }
 0x1c9   :  { %326 = vrot.lane.b32.xlu1 %v321_v38, %s2255_s25 }
 0x239   :  { %v325_v39 = vpop.permute.xlu0 %324 }
 0x23a   :  { %v330_v40 = vadd.f32 %v325_v39, %v2450_v22 }
 0x23b   :  { %v327_v41 = vpop.permute.xlu1 %326 }
 0x23c   :  { %1992 = vtanh.f32 %v330_v40  ;;  %v331_v42 = vadd.f32 %v327_v41, %v2452_v23 }
 0x23e   :  { %1994 = vtanh.f32 %v331_v42 }
 0x246   :  { %v1993_v43 = vpop.eup %1992 }
 0x247   :  { %338 = vrot.lane.b32.xlu0 %v1993_v43, %s2256_s3 }
 0x248   :  { %v1995_v44 = vpop.eup %1994 }
 0x249   :  { %340 = vrot.lane.b32.xlu1 %v1995_v44, %s2256_s3 }
 0x2b9   :  { %v339_v45 = vpop.permute.xlu0 %338 }
 0x2ba   :  { %v344_v49 = vmul.f32 %v339_v45, %v334_v46 }
 0x2bb   :  { %v341_v48 = vpop.permute.xlu1 %340 }
 0x2bc   :  { %v345_v51 = vmul.f32 %v341_v48, %v335_v47  ;;  %v2464_v54 = vadd.f32 %v346_v52, %v344_v49 }
 0x2be   :  { %v2462_v53 = vadd.f32 %v347_v50, %v345_v51  ;;  %v482_v29 = vrot.slane %v2464_v54, 7 }
 0x2c0   :  { %v352_v55 = vrot.slane %v2462_v53, 7 }
 0x2c2   :  { %v354_v56 = vsel %vm353_vm2, %v352_v55, %v2464_v54 }
 0x2c3   :  { %355 = vrot.lane.b32.xlu1 %v354_v56, %s2256_s3 }
 0x335   :  { %v356_v57 = vpop.permute.xlu1 %355 }
 0x336   :  { %1793 = vmatmul.mubr.msk.f32.vlgmr.msra.gmra.mrb[2].mxu0 %vm211_vm3, %v356_v57 }
 0x337   :  { %1918 = vmatpush3.bf16.msra.mxu0 %v2411_v8  ;;  %1814 = vmatprep.mubr.msk.f32.mxu0 %vm2253_vm0, %v2254_v1 }
 0x338   :  { %1919 = vmatprep.subr.bf16.mxu0 %v2252_v0 }
 0x33b   :  { %1921 = vmatpush3.bf16.msra.mxu0 %v2422_v13 }
 0x33c   :  { %1928 = vmatprep.subr.bf16.mxu0 %v2252_v0 }
 0x409   :  { %v425_v58 = vpop.f32.mrb[2].mxu0 }
 0x40a   :  { %v447_v59 = vadd.f32 %v425_v58, %v2442_v16  ;;  %v1794_v60 = vpop.f32.mrb[3].mxu0  ;;  %v430_v62 = vrot.slane %v425_v58, 7  ;;  %v434_v63 = vadd.f32 %v425_v58, %v2452_v23 }
 0x40c   :  { %452 = vrot.lane.b32.xlu1 %v447_v59, %s2255_s25  ;;  %v449_v61 = vrot.slane %v447_v59, 7  ;;  %v433_v2 = vadd.f32 %v430_v62, %v2450_v22  ;;  %v1676_v3 = vmul.f32 -1.442695, %v434_v63 }
 0x40e   :  { %450 = vrot.lane.b32.xlu0 %v449_v61, %s2255_s25  ;;  %v1675_v4 = vmul.f32 -1.442695, %v433_v2  ;;  %1996 = vpow2.f32 %v1676_v3 }
 0x410   :  { %1998 = vpow2.f32 %v1675_v4 }
 0x418   :  { %v1997_v5 = vpop.eup %1996 }
 0x419   :  { %v442_v7 = vadd.f32 1.0, %v1997_v5 }
 0x41a   :  { %v1999_v6 = vpop.eup %1998 }
 0x41b   :  { %v441_v9 = vadd.f32 1.0, %v1999_v6  ;;  %2000 = vrcp.f32 %v442_v7 }
 0x41d   :  { %2002 = vrcp.f32 %v441_v9 }
 0x425   :  { %v2001_v10 = vpop.eup %2000 }
 0x426   :  { %v471_v27 = vsub.f32 1.0, %v2001_v10  ;;  %v486_v34 = vmul.f32 %v2001_v10, %v352_v55 }
 0x427   :  { %v2003_v14 = vpop.eup %2002 }
 0x428   :  { %v470_v28 = vsub.f32 1.0, %v2003_v14  ;;  %v485_v32 = vmul.f32 %v2003_v14, %v482_v29 }
 0x47e   :  { %v453_v11 = vpop.permute.xlu1 %452 }
 0x47f   :  { %v457_v12 = vmul.f32 %v2001_v10, %v453_v11 }
 0x480   :  { %v451_v15 = vpop.permute.xlu0 %450 }
 0x481   :  { %v456_v17 = vmul.f32 %v2003_v14, %v451_v15  ;;  %462 = vrot.lane.b32.xlu1 %v457_v12, %s2255_s25 }
 0x483   :  { %460 = vrot.lane.b32.xlu0 %v456_v17, %s2255_s25 }
 0x4f3   :  { %v463_v18 = vpop.permute.xlu1 %462 }
 0x4f4   :  { %v467_v19 = vadd.f32 %v463_v18, %v2452_v23 }
 0x4f5   :  { %v461_v20 = vpop.permute.xlu0 %460 }
 0x4f6   :  { %2004 = vtanh.f32 %v467_v19  ;;  %v466_v21 = vadd.f32 %v461_v20, %v2450_v22 }
 0x4f8   :  { %2006 = vtanh.f32 %v466_v21 }
 0x500   :  { %v2005_v24 = vpop.eup %2004 }
 0x501   :  { %476 = vrot.lane.b32.xlu1 %v2005_v24, %s2256_s3 }
 0x502   :  { %v2007_v25 = vpop.eup %2006 }
 0x503   :  { %474 = vrot.lane.b32.xlu0 %v2007_v25, %s2256_s3 }
 0x573   :  { %v477_v26 = vpop.permute.xlu1 %476 }
 0x574   :  { %v481_v31 = vmul.f32 %v477_v26, %v471_v27 }
 0x575   :  { %v475_v30 = vpop.permute.xlu0 %474 }
 0x576   :  { %v480_v33 = vmul.f32 %v475_v30, %v470_v28  ;;  %v2491_v36 = vadd.f32 %v486_v34, %v481_v31 }
 0x578   :  { %v2489_v35 = vadd.f32 %v485_v32, %v480_v33  ;;  %v623_v9 = vrot.slane %v2491_v36, 7  ;;  %v1342_v21 = vsel %vm1340_vm4, %v2462_v53, %v2491_v36 }
 0x57a   :  { %v491_v37 = vrot.slane %v2489_v35, 1  ;;  %v622_v12 = vrot.slane %v2489_v35, 7  ;;  %v1341_v25 = vsel %vm1340_vm4, %v2464_v54, %v2489_v35 }
 0x57c   :  { %v492_v38 = vsel %vm353_vm2, %v2491_v36, %v491_v37 }
 0x57d   :  { %493 = vrot.lane.b32.xlu0 %v492_v38, %s2256_s3 }
 0x5ef   :  { %v494_v39 = vpop.permute.xlu0 %493 }
 0x5f0   :  { %1804 = vmatmul.mubr.msk.f32.vlgmr.msra.gmra.mrb[2].mxu1 %vm211_vm3, %v494_v39 }
 0x5f1   :  { %1924 = vmatpush3.bf16.msra.mxu1 %v2411_v8  ;;  %1825 = vmatprep.mubr.msk.f32.mxu1 %vm2253_vm0, %v2254_v1 }
 0x5f2   :  { %1925 = vmatprep.subr.bf16.mxu1 %v2252_v0 }
 0x5f5   :  { %1927 = vmatpush3.bf16.msra.mxu1 %v2422_v13 }
 0x5f6   :  { %1934 = vmatprep.subr.bf16.mxu1 %v2252_v0 }
 0x6c3   :  { %v563_v40 = vpop.f32.mrb[2].mxu1 }
 0x6c4   :  { %v586_v41 = vadd.f32 %v563_v40, %v2442_v16  ;;  %v1805_v42 = vpop.f32.mrb[3].mxu1  ;;  %v568_v45 = vrot.slane %v563_v40, 6  ;;  %v569_v46 = vrot.slane %v563_v40, 7 }
 0x6c6   :  { %v589_v43 = vrot.slane %v586_v41, 7  ;;  %v588_v44 = vrot.slane %v586_v41, 6  ;;  %v572_v47 = vadd.f32 %v568_v45, %v2450_v22  ;;  %v573_v48 = vadd.f32 %v569_v46, %v2452_v23 }
 0x6c8   :  { %592 = vrot.lane.b32.xlu0 %v589_v43, %s2255_s25  ;;  %590 = vrot.lane.b32.xlu1 %v588_v44, %s2255_s25  ;;  %v1678_v49 = vmul.f32 -1.442695, %v572_v47  ;;  %v1679_v50 = vmul.f32 -1.442695, %v573_v48 }
 0x6ca   :  { %2008 = vpow2.f32 %v1678_v49 }
 0x6cb   :  { %2010 = vpow2.f32 %v1679_v50 }
 0x6d4   :  { %v2009_v51 = vpop.eup %2008 }
 0x6d5   :  { %v2011_v52 = vpop.eup %2010  ;;  %v580_v55 = vadd.f32 1.0, %v2009_v51 }
 0x6d6   :  { %v581_v56 = vadd.f32 1.0, %v2011_v52 }
 0x6d7   :  { %2012 = vrcp.f32 %v580_v55 }
 0x6d8   :  { %2014 = vrcp.f32 %v581_v56 }
 0x6e1   :  { %v2013_v57 = vpop.eup %2012 }
 0x6e2   :  { %v2015_v58 = vpop.eup %2014  ;;  %v610_v11 = vsub.f32 1.0, %v2013_v57  ;;  %v626_v18 = vmul.f32 %v2013_v57, %v622_v12 }
 0x6e3   :  { %v611_v7 = vsub.f32 1.0, %v2015_v58  ;;  %v627_v14 = vmul.f32 %v2015_v58, %v623_v9 }
 0x73a   :  { %v593_v59 = vpop.permute.xlu0 %592  ;;  %v591_v60 = vpop.permute.xlu1 %590 }
 0x73b   :  { %v597_v61 = vmul.f32 %v2015_v58, %v593_v59  ;;  %v596_v62 = vmul.f32 %v2013_v57, %v591_v60 }
 0x73d   :  { %602 = vrot.lane.b32.xlu0 %v597_v61, %s2255_s25  ;;  %600 = vrot.lane.b32.xlu1 %v596_v62, %s2255_s25 }
 0x7af   :  { %v603_v63 = vpop.permute.xlu0 %602  ;;  %v601_v2 = vpop.permute.xlu1 %600 }
 0x7b0   :  { %v607_v3 = vadd.f32 %v603_v63, %v2452_v23  ;;  %v606_v4 = vadd.f32 %v601_v2, %v2450_v22 }
 0x7b2   :  { %2016 = vtanh.f32 %v607_v3 }
 0x7b3   :  { %2018 = vtanh.f32 %v606_v4 }
 0x7bc   :  { %v2017_v5 = vpop.eup %2016 }
 0x7bd   :  { %v2019_v6 = vpop.eup %2018  ;;  %616 = vrot.lane.b32.xlu0 %v2017_v5, %s2256_s3 }
 0x7be   :  { %614 = vrot.lane.b32.xlu1 %v2019_v6, %s2256_s3 }
 0x82f   :  { %v617_v10 = vpop.permute.xlu0 %616 }
 0x830   :  { %v621_v15 = vmul.f32 %v617_v10, %v611_v7  ;;  %v615_v17 = vpop.permute.xlu1 %614 }
 0x831   :  { %v620_v19 = vmul.f32 %v615_v17, %v610_v11 }
 0x832   :  { %v629_v20 = vadd.f32 %v627_v14, %v621_v15 }
 0x833   :  { %v2519_v24 = vadd.f32 %v626_v18, %v620_v19 }
 0x834   :  { %v2523_v26 = vsel %vm1343_vm5, %v1342_v21, %v629_v20  ;;  %v633_v27 = vrot.slane %v629_v20, 1  ;;  %v765_v60 = vrot.slane %v629_v20, 7 }
 0x835   :  { %v2526_v28 = vsel %vm1343_vm5, %v1341_v25, %v2519_v24  ;;  %v632_v29 = vrot.slane %v2519_v24, 2  ;;  %v764_v63 = vrot.slane %v2519_v24, 7 }
 0x837   :  { %v634_v30 = vsel %vm353_vm2, %v633_v27, %v632_v29 }
 0x838   :  { %635 = vrot.lane.b32.xlu1 %v634_v30, %s2256_s3 }
 0x8aa   :  { %v636_v31 = vpop.permute.xlu1 %635 }
 0x8ab   :  { %1815 = vmatmul.mubr.msk.f32.vlgmr.msra.gmra.mrb[4].mxu0 %vm211_vm3, %v636_v31 }
 0x8ac   :  { %1930 = vmatpush3.bf16.msra.mxu0 %v2411_v8  ;;  %1836 = vmatprep.mubr.msk.f32.mxu0 %vm2253_vm0, %v2254_v1 }
 0x8ad   :  { %1931 = vmatprep.subr.bf16.mxu0 %v2252_v0 }
 0x8b0   :  { %1933 = vmatpush3.bf16.msra.mxu0 %v2422_v13 }
 0x8b1   :  { %1940 = vmatprep.subr.bf16.mxu0 %v2252_v0 }
 0x97e   :  { %v705_v53 = vpop.f32.mrb[4].mxu0 }
 0x97f   :  { %v728_v54 = vadd.f32 %v705_v53, %v2442_v16  ;;  %v1816_v32 = vpop.f32.mrb[5].mxu0  ;;  %v710_v35 = vrot.slane %v705_v53, 5  ;;  %v711_v36 = vrot.slane %v705_v53, 6 }
 0x981   :  { %v731_v33 = vrot.slane %v728_v54, 6  ;;  %v730_v34 = vrot.slane %v728_v54, 5  ;;  %v714_v37 = vadd.f32 %v710_v35, %v2450_v22  ;;  %v715_v38 = vadd.f32 %v711_v36, %v2452_v23 }
 0x983   :  { %734 = vrot.lane.b32.xlu1 %v731_v33, %s2255_s25  ;;  %732 = vrot.lane.b32.xlu0 %v730_v34, %s2255_s25  ;;  %v1681_v39 = vmul.f32 -1.442695, %v714_v37  ;;  %v1682_v40 = vmul.f32 -1.442695, %v715_v38 }
 0x985   :  { %2020 = vpow2.f32 %v1681_v39 }
 0x986   :  { %2022 = vpow2.f32 %v1682_v40 }
 0x98f   :  { %v2021_v41 = vpop.eup %2020 }
 0x990   :  { %v2023_v42 = vpop.eup %2022  ;;  %v722_v43 = vadd.f32 1.0, %v2021_v41 }
 0x991   :  { %v723_v44 = vadd.f32 1.0, %v2023_v42 }
 0x992   :  { %2024 = vrcp.f32 %v722_v43 }
 0x993   :  { %2026 = vrcp.f32 %v723_v44 }
 0x99c   :  { %v2025_v45 = vpop.eup %2024 }
 0x99d   :  { %v2027_v46 = vpop.eup %2026  ;;  %v752_v62 = vsub.f32 1.0, %v2025_v45  ;;  %v768_v5 = vmul.f32 %v2025_v45, %v764_v63 }
 0x99e   :  { %v753_v59 = vsub.f32 1.0, %v2027_v46  ;;  %v769_v2 = vmul.f32 %v2027_v46, %v765_v60 }
 0x9f5   :  { %v735_v47 = vpop.permute.xlu1 %734  ;;  %v733_v48 = vpop.permute.xlu0 %732 }
 0x9f6   :  { %v739_v49 = vmul.f32 %v2027_v46, %v735_v47  ;;  %v738_v50 = vmul.f32 %v2025_v45, %v733_v48 }
 0x9f8   :  { %744 = vrot.lane.b32.xlu1 %v739_v49, %s2255_s25  ;;  %742 = vrot.lane.b32.xlu0 %v738_v50, %s2255_s25 }
 0xa6a   :  { %v745_v51 = vpop.permute.xlu1 %744  ;;  %v743_v52 = vpop.permute.xlu0 %742 }
 0xa6b   :  { %v749_v55 = vadd.f32 %v745_v51, %v2452_v23  ;;  %v748_v56 = vadd.f32 %v743_v52, %v2450_v22 }
 0xa6d   :  { %2028 = vtanh.f32 %v749_v55 }
 0xa6e   :  { %2030 = vtanh.f32 %v748_v56 }
 0xa77   :  { %v2029_v57 = vpop.eup %2028 }
 0xa78   :  { %v2031_v58 = vpop.eup %2030  ;;  %758 = vrot.lane.b32.xlu1 %v2029_v57, %s2256_s3 }
 0xa79   :  { %756 = vrot.lane.b32.xlu0 %v2031_v58, %s2256_s3 }
 0xaea   :  { %v759_v61 = vpop.permute.xlu1 %758 }
 0xaeb   :  { %v763_v3 = vmul.f32 %v759_v61, %v753_v59  ;;  %v757_v4 = vpop.permute.xlu0 %756 }
 0xaec   :  { %v762_v6 = vmul.f32 %v757_v4, %v752_v62 }
 0xaed   :  { %v771_v7 = vadd.f32 %v769_v2, %v763_v3 }
 0xaee   :  { %v770_v9 = vadd.f32 %v768_v5, %v762_v6 }
 0xaef   :  { %v2551_v10 = vsel %vm1346_vm6, %v2523_v26, %v771_v7  ;;  %v775_v11 = vrot.slane %v771_v7, 2  ;;  %v907_v46 = vrot.slane %v771_v7, 7 }
 0xaf0   :  { %v2554_v12 = vsel %vm1346_vm6, %v2526_v28, %v770_v9  ;;  %v774_v14 = vrot.slane %v770_v9, 3  ;;  %v906_v49 = vrot.slane %v770_v9, 7 }
 0xaf2   :  { %v776_v15 = vsel %vm353_vm2, %v775_v11, %v774_v14 }
 0xaf3   :  { %777 = vrot.lane.b32.xlu0 %v776_v15, %s2256_s3 }
 0xb65   :  { %v778_v17 = vpop.permute.xlu0 %777 }
 0xb66   :  { %1826 = vmatmul.mubr.msk.f32.vlgmr.msra.gmra.mrb[4].mxu1 %vm211_vm3, %v778_v17 }
 0xb67   :  { %1936 = vmatpush3.bf16.msra.mxu1 %v2411_v8  ;;  %1847 = vmatprep.mubr.msk.f32.mxu1 %vm2253_vm0, %v2254_v1 }
 0xb68   :  { %1937 = vmatprep.subr.bf16.mxu1 %v2252_v0 }
 0xb6b   :  { %1939 = vmatpush3.bf16.msra.mxu1 %v2422_v13 }
 0xc39   :  { %v847_v18 = vpop.f32.mrb[4].mxu1 }
 0xc3a   :  { %v870_v19 = vadd.f32 %v847_v18, %v2442_v16  ;;  %v1827_v20 = vpop.f32.mrb[5].mxu1  ;;  %v852_v25 = vrot.slane %v847_v18, 4  ;;  %v853_v26 = vrot.slane %v847_v18, 5 }
 0xc3c   :  { %v873_v21 = vrot.slane %v870_v19, 5  ;;  %v872_v24 = vrot.slane %v870_v19, 4  ;;  %v856_v27 = vadd.f32 %v852_v25, %v2450_v22  ;;  %v857_v28 = vadd.f32 %v853_v26, %v2452_v23 }
 0xc3e   :  { %876 = vrot.lane.b32.xlu0 %v873_v21, %s2255_s25  ;;  %874 = vrot.lane.b32.xlu1 %v872_v24, %s2255_s25  ;;  %v1684_v29 = vmul.f32 -1.442695, %v856_v27  ;;  %v1685_v30 = vmul.f32 -1.442695, %v857_v28 }
 0xc40   :  { %2032 = vpow2.f32 %v1684_v29 }
 0xc41   :  { %2034 = vpow2.f32 %v1685_v30 }
 0xc4a   :  { %v2033_v31 = vpop.eup %2032 }
 0xc4b   :  { %v2035_v53 = vpop.eup %2034  ;;  %v864_v54 = vadd.f32 1.0, %v2033_v31 }
 0xc4c   :  { %v865_v32 = vadd.f32 1.0, %v2035_v53 }
 0xc4d   :  { %2036 = vrcp.f32 %v864_v54 }
 0xc4e   :  { %2038 = vrcp.f32 %v865_v32 }
 0xc57   :  { %v2037_v33 = vpop.eup %2036 }
 0xc58   :  { %v2039_v34 = vpop.eup %2038  ;;  %v894_v48 = vsub.f32 1.0, %v2037_v33  ;;  %v910_v55 = vmul.f32 %v2037_v33, %v906_v49 }
 0xc59   :  { %v895_v45 = vsub.f32 1.0, %v2039_v34  ;;  %v911_v50 = vmul.f32 %v2039_v34, %v907_v46 }
 0xcb0   :  { %v877_v35 = vpop.permute.xlu0 %876  ;;  %v875_v36 = vpop.permute.xlu1 %874 }
 0xcb1   :  { %v881_v37 = vmul.f32 %v2039_v34, %v877_v35  ;;  %v880_v38 = vmul.f32 %v2037_v33, %v875_v36 }
 0xcb3   :  { %886 = vrot.lane.b32.xlu0 %v881_v37, %s2255_s25  ;;  %884 = vrot.lane.b32.xlu1 %v880_v38, %s2255_s25 }
 0xd25   :  { %v887_v39 = vpop.permute.xlu0 %886  ;;  %v885_v40 = vpop.permute.xlu1 %884 }
 0xd26   :  { %v891_v41 = vadd.f32 %v887_v39, %v2452_v23  ;;  %v890_v42 = vadd.f32 %v885_v40, %v2450_v22 }
 0xd28   :  { %2040 = vtanh.f32 %v891_v41 }
 0xd29   :  { %2042 = vtanh.f32 %v890_v42 }
 0xd32   :  { %v2041_v43 = vpop.eup %2040 }
 0xd33   :  { %v2043_v44 = vpop.eup %2042  ;;  %900 = vrot.lane.b32.xlu0 %v2041_v43, %s2256_s3 }
 0xd34   :  { %898 = vrot.lane.b32.xlu1 %v2043_v44, %s2256_s3 }
 0xda5   :  { %v901_v47 = vpop.permute.xlu0 %900 }
 0xda6   :  { %v905_v51 = vmul.f32 %v901_v47, %v895_v45  ;;  %v899_v52 = vpop.permute.xlu1 %898 }
 0xda7   :  { %v904_v56 = vmul.f32 %v899_v52, %v894_v48 }
 0xda8   :  { %v913_v57 = vadd.f32 %v911_v50, %v905_v51 }
 0xda9   :  { %v912_v58 = vadd.f32 %v910_v55, %v904_v56 }
 0xdaa   :  { %v2576_v59 = vsel %vm1349_vm7, %v2551_v10, %v913_v57  ;;  %v917_v60 = vrot.slane %v913_v57, 3  ;;  %v1049_v53 = vrot.slane %v913_v57, 7 }
 0xdab   :  { %v2579_v61 = vsel %vm1349_vm7, %v2554_v12, %v912_v58  ;;  %v916_v62 = vrot.slane %v912_v58, 4  ;;  %v1048_v33 = vrot.slane %v912_v58, 7 }
 0xdad   :  { %v918_v63 = vsel %vm353_vm2, %v917_v60, %v916_v62 }
 0xdae   :  { %919 = vrot.lane.b32.xlu1 %v918_v63, %s2256_s3 }
 0xe20   :  { %v920_v2 = vpop.permute.xlu1 %919 }
 0xe21   :  { %1837 = vmatmul.mubr.msk.f32.vlgmr.msra.gmra.mrb[6].mxu0 %vm211_vm3, %v920_v2 }
 0xe22   :  { %1942 = vmatpush3.bf16.msra.mxu0 %v2411_v8  ;;  %1858 = vmatprep.mubr.msk.f32.mxu0 %vm2253_vm0, %v2254_v1 }
 0xe23   :  { %1943 = vmatprep.subr.bf16.mxu0 %v2252_v0 }
 0xe26   :  { %1945 = vmatpush3.bf16.msra.mxu0 %v2422_v13 }
 0xef4   :  { %v989_v3 = vpop.f32.mrb[6].mxu0 }
 0xef5   :  { %v1012_v4 = vadd.f32 %v989_v3, %v2442_v16  ;;  %v1838_v5 = vpop.f32.mrb[7].mxu0  ;;  %v994_v9 = vrot.slane %v989_v3, 3  ;;  %v995_v10 = vrot.slane %v989_v3, 4 }
 0xef7   :  { %v1015_v6 = vrot.slane %v1012_v4, 4  ;;  %v1014_v7 = vrot.slane %v1012_v4, 3  ;;  %v998_v8 = vadd.f32 %v994_v9, %v2450_v22  ;;  %v999_v1 = vadd.f32 %v995_v10, %v2452_v23 }
 0xef9   :  { %1018 = vrot.lane.b32.xlu1 %v1015_v6, %s2255_s25  ;;  %1016 = vrot.lane.b32.xlu0 %v1014_v7, %s2255_s25  ;;  %v1687_v11 = vmul.f32 -1.442695, %v998_v8  ;;  %v1688_v0 = vmul.f32 -1.442695, %v999_v1 }
 0xefb   :  { %2044 = vpow2.f32 %v1687_v11 }
 0xefc   :  { %2046 = vpow2.f32 %v1688_v0 }
 0xf05   :  { %v2045_v13 = vpop.eup %2044 }
 0xf06   :  { %v2047_v12 = vpop.eup %2046  ;;  %v1006_v14 = vadd.f32 1.0, %v2045_v13 }
 0xf07   :  { %v1007_v15 = vadd.f32 1.0, %v2047_v12 }
 0xf08   :  { %2048 = vrcp.f32 %v1006_v14 }
 0xf09   :  { %2050 = vrcp.f32 %v1007_v15 }
 0xf12   :  { %v2049_v17 = vpop.eup %2048 }
 0xf13   :  { %v2051_v18 = vpop.eup %2050  ;;  %v1036_v32 = vsub.f32 1.0, %v2049_v17  ;;  %v1052_v37 = vmul.f32 %v2049_v17, %v1048_v33 }
 0xf14   :  { %v1037_v31 = vsub.f32 1.0, %v2051_v18  ;;  %v1053_v34 = vmul.f32 %v2051_v18, %v1049_v53 }
 0xf6b   :  { %v1019_v19 = vpop.permute.xlu1 %1018  ;;  %v1017_v20 = vpop.permute.xlu0 %1016 }
 0xf6c   :  { %v1023_v21 = vmul.f32 %v2051_v18, %v1019_v19  ;;  %v1022_v24 = vmul.f32 %v2049_v17, %v1017_v20 }
 0xf6e   :  { %1028 = vrot.lane.b32.xlu1 %v1023_v21, %s2255_s25  ;;  %1026 = vrot.lane.b32.xlu0 %v1022_v24, %s2255_s25 }
 0xfe0   :  { %v1029_v25 = vpop.permute.xlu1 %1028  ;;  %v1027_v26 = vpop.permute.xlu0 %1026 }
 0xfe1   :  { %v1033_v27 = vadd.f32 %v1029_v25, %v2452_v23  ;;  %v1032_v28 = vadd.f32 %v1027_v26, %v2450_v22 }
 0xfe3   :  { %2052 = vtanh.f32 %v1033_v27 }
 0xfe4   :  { %2054 = vtanh.f32 %v1032_v28 }
 0xfed   :  { %v2053_v29 = vpop.eup %2052 }
 0xfee   :  { %v2055_v30 = vpop.eup %2054  ;;  %1042 = vrot.lane.b32.xlu1 %v2053_v29, %s2256_s3 }
 0xfef   :  { %1040 = vrot.lane.b32.xlu0 %v2055_v30, %s2256_s3 }
0x1060   :  { %v1043_v54 = vpop.permute.xlu1 %1042 }
0x1061   :  { %v1047_v35 = vmul.f32 %v1043_v54, %v1037_v31  ;;  %v1041_v36 = vpop.permute.xlu0 %1040 }
0x1062   :  { %v1046_v38 = vmul.f32 %v1041_v36, %v1036_v32 }
0x1063   :  { %v1055_v39 = vadd.f32 %v1053_v34, %v1047_v35 }
0x1064   :  { %v1054_v40 = vadd.f32 %v1052_v37, %v1046_v38 }
0x1065   :  { %v1059_v41 = vrot.slane %v1055_v39, 4  ;;  %v1354_v42 = vsel %vm1352_vm8, %v2576_v59, %v1055_v39  ;;  %v1191_v12 = vrot.slane %v1055_v39, 7 }
0x1066   :  { %v1058_v43 = vrot.slane %v1054_v40, 5  ;;  %v1353_v44 = vsel %vm1352_vm8, %v2579_v61, %v1054_v40  ;;  %v1190_v17 = vrot.slane %v1054_v40, 7 }
0x1068   :  { %v1060_v45 = vsel %vm353_vm2, %v1059_v41, %v1058_v43 }
0x1069   :  { %1061 = vrot.lane.b32.xlu0 %v1060_v45, %s2256_s3 }
0x10db   :  { %v1062_v46 = vpop.permute.xlu0 %1061 }
0x10dc   :  { %1848 = vmatmul.mubr.msk.f32.vlgmr.msra.gmra.mrb[6].mxu1 %vm211_vm3, %v1062_v46 }
0x11af   :  { %v1131_v47 = vpop.f32.mrb[6].mxu1 }
0x11b0   :  { %v1154_v48 = vadd.f32 %v1131_v47, %v2442_v16  ;;  %v1849_v49 = vpop.f32.mrb[7].mxu1  ;;  %v1136_v52 = vrot.slane %v1131_v47, 2  ;;  %v1137_v55 = vrot.slane %v1131_v47, 3 }
0x11b2   :  { %v1157_v50 = vrot.slane %v1154_v48, 3  ;;  %v1156_v51 = vrot.slane %v1154_v48, 2  ;;  %v1140_v56 = vadd.f32 %v1136_v52, %v2450_v22  ;;  %v1141_v57 = vadd.f32 %v1137_v55, %v2452_v23 }
0x11b4   :  { %1160 = vrot.lane.b32.xlu0 %v1157_v50, %s2255_s25  ;;  %1158 = vrot.lane.b32.xlu1 %v1156_v51, %s2255_s25  ;;  %v1690_v58 = vmul.f32 -1.442695, %v1140_v56  ;;  %v1691_v59 = vmul.f32 -1.442695, %v1141_v57  ;;  %v1361_v57 = vld [vmem:[%s2698_s5] sm:$0xff] }
0x11b6   :  { %2056 = vpow2.f32 %v1690_v58  ;;  %v1362_v58 = vld [vmem:[%s2698_s5 + $0x8] sm:$0xff] }
0x11b7   :  { %2058 = vpow2.f32 %v1691_v59  ;;  %v1363_v59 = vld [vmem:[%s2698_s5 + $0x10] sm:$0xff] }
0x11c0   :  { %v2057_v60 = vpop.eup %2056 }
0x11c1   :  { %v2059_v61 = vpop.eup %2058  ;;  %v1148_v62 = vadd.f32 1.0, %v2057_v60  ;;  %v1946_v60 = vpack.c.bf16 %v1362_v58, %v1361_v57 }
0x11c2   :  { %v1149_v63 = vadd.f32 1.0, %v2059_v61 }
0x11c3   :  { %2060 = vrcp.f32 %v1148_v62  ;;  %1947 = vmatprep.subr.bf16.mxu1 %v1946_v60 }
0x11c4   :  { %2062 = vrcp.f32 %v1149_v63  ;;  %1949 = vmatpush3.bf16.msra.mxu1 %v1946_v60  ;;  %v1459_v63 = vld [vmem:[#allocation8] sm:$0xff] }
0x11cd   :  { %v2061_v2 = vpop.eup %2060 }
0x11ce   :  { %v2063_v3 = vpop.eup %2062  ;;  %v1178_v15 = vsub.f32 1.0, %v2061_v2  ;;  %v1194_v21 = vmul.f32 %v2061_v2, %v1190_v17 }
0x11cf   :  { %v1179_v13 = vsub.f32 1.0, %v2063_v3  ;;  %v1195_v18 = vmul.f32 %v2063_v3, %v1191_v12 }
0x1226   :  { %v1161_v4 = vpop.permute.xlu0 %1160  ;;  %v1159_v5 = vpop.permute.xlu1 %1158 }
0x1227   :  { %v1165_v6 = vmul.f32 %v2063_v3, %v1161_v4  ;;  %v1164_v7 = vmul.f32 %v2061_v2, %v1159_v5  ;;  %v1460_v2 = vld [vmem:[#allocation8 + $0x8] sm:$0xff] }
0x1228   :  { %v1954_v3 = vpack.c.bf16 %v1460_v2, %v1459_v63 }
0x1229   :  { %1170 = vrot.lane.b32.xlu0 %v1165_v6, %s2255_s25  ;;  %1168 = vrot.lane.b32.xlu1 %v1164_v7, %s2255_s25 }
0x122a   :  { %1955 = vmatprep.subr.bf16.mxu0 %v1954_v3 }
0x129b   :  { %v1171_v9 = vpop.permute.xlu0 %1170  ;;  %v1169_v10 = vpop.permute.xlu1 %1168 }
0x129c   :  { %v1175_v8 = vadd.f32 %v1171_v9, %v2452_v23  ;;  %v1174_v1 = vadd.f32 %v1169_v10, %v2450_v22 }
0x129e   :  { %2064 = vtanh.f32 %v1175_v8 }
0x129f   :  { %2066 = vtanh.f32 %v1174_v1 }
0x12a8   :  { %v2065_v11 = vpop.eup %2064 }
0x12a9   :  { %v2067_v0 = vpop.eup %2066  ;;  %1184 = vrot.lane.b32.xlu0 %v2065_v11, %s2256_s3 }
0x12aa   :  { %1182 = vrot.lane.b32.xlu1 %v2067_v0, %s2256_s3 }
0x131b   :  { %v1185_v14 = vpop.permute.xlu0 %1184 }
0x131c   :  { %v1189_v19 = vmul.f32 %v1185_v14, %v1179_v13  ;;  %v1183_v20 = vpop.permute.xlu1 %1182 }
0x131d   :  { %v1188_v24 = vmul.f32 %v1183_v20, %v1178_v15  ;;  %v1462_v20 = vld [vmem:[#allocation8 + $0x18] sm:$0xff] }
0x131e   :  { %v2616_v25 = vadd.f32 %v1195_v18, %v1189_v19  ;;  %v1461_v19 = vld [vmem:[#allocation8 + $0x10] sm:$0xff] }
0x131f   :  { %v2618_v26 = vadd.f32 %v1194_v21, %v1188_v24  ;;  %v1958_v21 = vpack.c.bf16 %v1462_v20, %v1461_v19  ;;  %v1553_v24 = vld [vmem:[%s2702_s9] sm:$0xff] }
0x1320   :  { %v1201_v27 = vrot.slane %v2616_v25, 5  ;;  %v2622_v28 = vsel %vm1355_vm9, %v1354_v42, %v2616_v25  ;;  %v1333_v5 = vrot.slane %v2616_v25, 7  ;;  %v1554_v25 = vld [vmem:[%s2702_s9 + $0x8] sm:$0xff] }
0x1321   :  { %v1200_v29 = vrot.slane %v2618_v26, 6  ;;  %v2626_v30 = vsel %vm1355_vm9, %v1353_v44, %v2618_v26  ;;  %v1332_v9 = vrot.slane %v2618_v26, 7  ;;  %v1962_v26 = vpack.c.bf16 %v1554_v25, %v1553_v24 }
0x1323   :  { %v1202_v31 = vsel %vm353_vm2, %v1201_v27, %v1200_v29  ;;  %v1695_v27 = vld [vmem:[#allocation7] ss:$0 sm:$0xff] }
0x1324   :  { %1203 = vrot.lane.b32.xlu1 %v1202_v31, %s2256_s3 }
0x1396   :  { %v1204_v53 = vpop.permute.xlu1 %1203 }
0x1397   :  { %1859 = vmatmul.mubr.msk.f32.vlgmr.msra.gmra.mrb[8].mxu0 %vm211_vm3, %v1204_v53 }
0x1398   :  { %1957 = vmatpush3.bf16.msra.mxu0 %v1954_v3 }
0x1399   :  { %1959 = vmatprep.subr.bf16.mxu0 %v1958_v21 }
0x139c   :  { %1961 = vmatpush3.bf16.msra.mxu0 %v1958_v21 }
0x146a   :  { %v1273_v54 = vpop.f32.mrb[8].mxu0 }
0x146b   :  { %v1296_v32 = vadd.f32 %v1273_v54, %v2442_v16  ;;  %v1860_v33 = vpop.f32.mrb[9].mxu0  ;;  %v1278_v36 = vrot.slane %v1273_v54, 1  ;;  %v1279_v37 = vrot.slane %v1273_v54, 2 }
0x146c   :  { %v1556_v33 = vld [vmem:[%s2702_s9 + $0x18] sm:$0xff] }
0x146d   :  { %v1299_v34 = vrot.slane %v1296_v32, 2  ;;  %v1298_v35 = vrot.slane %v1296_v32, 1  ;;  %v1282_v38 = vadd.f32 %v1278_v36, %v2450_v22  ;;  %v1283_v39 = vadd.f32 %v1279_v37, %v2452_v23  ;;  %v1555_v32 = vld [vmem:[%s2702_s9 + $0x10] sm:$0xff]  ;;  %s2212_s9 = scalar_lea.vmem %s1654_s22, 256 }
0x146e   :  { %p2213_p6 = scmp.ne.s32.totalorder %s1654_s22, %s2212_s9  ;;  %p2218_p8 = scmp.lt.s32.totalorder %s2212_s9, %s2212_s9 }
0x146f   :  { %1302 = vrot.lane.b32.xlu1 %v1299_v34, %s2255_s25  ;;  %1300 = vrot.lane.b32.xlu0 %v1298_v35, %s2255_s25  ;;  %v1693_v40 = vmul.f32 -1.442695, %v1282_v38  ;;  %v1694_v41 = vmul.f32 -1.442695, %v1283_v39  ;;  %v1966_v34 = vpack.c.bf16 %v1556_v33, %v1555_v32  ;;  %v1698_v35 = vld [vmem:[#allocation10] ss:$0 sm:$0xff] }
0x1470   :  { %p2219_p9 = por %p2218_p8, %p2217_p7 }
0x1471   :  { %2068 = vpow2.f32 %v1693_v40 }
0x1472   :  { %2070 = vpow2.f32 %v1694_v41  ;;  %p2220_p10 = pnand %p2219_p9, %p2213_p6 }
0x147b   :  { %v2069_v42 = vpop.eup %2068 }
0x147c   :  { %v2071_v43 = vpop.eup %2070  ;;  %v1290_v16 = vadd.f32 1.0, %v2069_v42  ;;  %v1701_v42 = vld [vmem:[#allocation11] ss:$0 sm:$0xff] }
0x147d   :  { %v1291_v44 = vadd.f32 1.0, %v2071_v43 }
0x147e   :  { %2072 = vrcp.f32 %v1290_v16 }
0x147f   :  { %2074 = vrcp.f32 %v1291_v44 }
0x1488   :  { %v2073_v45 = vpop.eup %2072 }
0x1489   :  { %v2075_v46 = vpop.eup %2074  ;;  %v1320_v7 = vsub.f32 1.0, %v2073_v45  ;;  %v1336_v11 = vmul.f32 %v2073_v45, %v1332_v9 }
0x148a   :  { %v1321_v4 = vsub.f32 1.0, %v2075_v46  ;;  %v1337_v10 = vmul.f32 %v2075_v46, %v1333_v5 }
0x14e1   :  { %v1303_v47 = vpop.permute.xlu1 %1302  ;;  %v1301_v48 = vpop.permute.xlu0 %1300 }
0x14e2   :  { %v1307_v49 = vmul.f32 %v2075_v46, %v1303_v47  ;;  %v1306_v50 = vmul.f32 %v2073_v45, %v1301_v48 }
0x14e4   :  { %1312 = vrot.lane.b32.xlu1 %v1307_v49, %s2255_s25  ;;  %1310 = vrot.lane.b32.xlu0 %v1306_v50, %s2255_s25 }
0x1556   :  { %v1313_v51 = vpop.permute.xlu1 %1312  ;;  %v1311_v52 = vpop.permute.xlu0 %1310 }
0x1557   :  { %v1317_v55 = vadd.f32 %v1313_v51, %v2452_v23  ;;  %v1316_v56 = vadd.f32 %v1311_v52, %v2450_v22  ;;  %v1364_v23 = vld [vmem:[%s2698_s5 + $0x18] sm:$0xff] }
0x1558   :  { %v1950_v22 = vpack.c.bf16 %v1364_v23, %v1363_v59 }
0x1559   :  { %2076 = vtanh.f32 %v1317_v55 }
0x155a   :  { %2078 = vtanh.f32 %v1316_v56  ;;  %1951 = vmatprep.subr.bf16.mxu1 %v1950_v22 }
0x155b   :  { %1953 = vmatpush3.bf16.msra.mxu1 %v1950_v22 }
0x155c   :  { %1963 = vmatprep.subr.bf16.mxu1 %v1962_v26 }
0x1563   :  { %v2077_v61 = vpop.eup %2076 }
0x1564   :  { %v2079_v62 = vpop.eup %2078  ;;  %1326 = vrot.lane.b32.xlu1 %v2077_v61, %s2256_s3 }
0x1565   :  { %1324 = vrot.lane.b32.xlu0 %v2079_v62, %s2256_s3 }
0x15d6   :  { %v1327_v6 = vpop.permute.xlu1 %1326 }
0x15d7   :  { %v1331_v8 = vmul.f32 %v1327_v6, %v1321_v4  ;;  %v1325_v1 = vpop.permute.xlu0 %1324 }
0x15d8   :  { %v1330_v0 = vmul.f32 %v1325_v1, %v1320_v7 }
0x15d9   :  { %v1339_v13 = vadd.f32 %v1337_v10, %v1331_v8 }
0x15da   :  { %v1338_v12 = vadd.f32 %v1336_v11, %v1330_v0 }
0x15db   :  { %v1360_v14 = vsel %vm1358_vm10, %v2622_v28, %v1339_v13 }
0x15dc   :  { %1376 = vrot.lane.b32.xlu1 %v1360_v14, %s2256_s3  ;;  %v1359_v15 = vsel %vm1358_vm10, %v2626_v30, %v1338_v12 }
0x15dd   :  { %1374 = vrot.lane.b32.xlu0 %v1359_v15, %s2256_s3 }
0x164e   :  { %v1377_v17 = vpop.permute.xlu1 %1376 }
0x164f   :  { %v1375_v18 = vpop.permute.xlu0 %1374 }
0x1650   :  { %1869 = vmatprep.mubr.msk.f32.mxu1 %vm211_vm3, %v1375_v18 }
0x1651   :  { %1870 = vmatmul.mubr.msk.f32.vlgmr.msra.gmra.mrb[8].mxu1 %vm211_vm3, %v1377_v17 }
0x1652   :  { %1965 = vmatpush3.bf16.msra.mxu1 %v1962_v26 }
0x1653   :  { %1967 = vmatprep.subr.bf16.mxu1 %v1966_v34 }
0x1656   :  { %1969 = vmatpush3.bf16.msra.mxu1 %v1966_v34 }
0x1724   :  { %v1871_v28 = vpop.f32.mrb[8].mxu1 }
0x1725   :  { %v1454_v29 = vadd.f32 %v1871_v28, %v1695_v27  ;;  %v1448_v30 = vpop.f32.mrb[9].mxu1 }
0x1726   :  { %v1449_v31 = vadd.f32 %v1695_v27, %v1448_v30 }
0x1727   :  { %v1458_v54 = vmax.f32 %v1454_v29, 0.0 }
0x1728   :  { %v1457_v53 = vmax.f32 %v1449_v31, 0.0 }
0x172a   :  { %1880 = vmatprep.mubr.msk.f32.mxu0 %vm211_vm3, %v1457_v53 }
0x172b   :  { %1881 = vmatmul.mubr.msk.f32.vlgmr.msra.gmra.mrb[10].mxu0 %vm211_vm3, %v1458_v54 }
0x17fe   :  { %v1882_v36 = vpop.f32.mrb[10].mxu0 }
0x17ff   :  { %v1548_v37 = vadd.f32 %v1882_v36, %v1698_v35  ;;  %v1542_v38 = vpop.f32.mrb[11].mxu0 }
0x1800   :  { %v1543_v39 = vadd.f32 %v1698_v35, %v1542_v38 }
0x1801   :  { %v1552_v41 = vmax.f32 %v1548_v37, 0.0 }
0x1802   :  { %v1551_v40 = vmax.f32 %v1543_v39, 0.0 }
0x1804   :  { %1891 = vmatprep.mubr.msk.f32.mxu1 %vm211_vm3, %v1551_v40 }
0x1805   :  { %1892 = vmatmul.mubr.msk.f32.vlgmr.msra.gmra.mrb[10].mxu1 %vm211_vm3, %v1552_v41 }
0x18d8   :  { %v1893_v43 = vpop.f32.mrb[10].mxu1 }
0x18d9   :  { %v1642_v16 = vadd.f32 %v1893_v43, %v1701_v42  ;;  %v1636_v44 = vpop.f32.mrb[11].mxu1 }
0x18da   :  { %v1637_v45 = vadd.f32 %v1701_v42, %v1636_v44 }
0x18db   :  { %1647 = vst.msk [vmem:[#allocation13 + $0x8] sm:$0xff] %vm1645_vm11, %v1642_v16 }
0x18dc   :  { %1646 = vst.msk [vmem:[#allocation13] sm:$0xff] %vm1645_vm11, %v1637_v45 }
0x18dd   :  { %2223 = shalt.err (!%p2220_p10)
}
0x18de   :  { %s2224_s19 = scalar_lea.hbm %s2704_s11, 256 }
0x18df   :  { %p2225_p11 = scmp.ne.s32.totalorder %s2704_s11, %s2224_s19  ;;  %p2228_p12 = scmp.lt.u32.totalorder %s2224_s19, %s2704_s11 }
0x18e1   :  { %p2230_p13 = pnand %p2228_p12, %p2225_p11 }
0x18e3   :  { %2233 = shalt.err (!%p2230_p13)
}
0x18e4   :  { %1659 = dma.vmem_to_hbm [thread:$0]  %s1654_s22, 256, %s2704_s11, [#allocation4], %s2247_s18, %s2247_s18, %s2248_s23  }
0x18e5   :  { %2242 = dma.done.wait [#allocation4], 256  }
0x18e6   :  { %2243 = vsyncadd [#allocation4], 4294967040 }
0x18e7   :  { %1663 = vsyncpa [#allocation3], 1 }
0x18e8   :  { %1664 = vsyncpa [#allocation6], 1 }
0x18e9   :  { %1665 = vsyncpa [#allocation9], 1 }
0x18ea   :  { %1666 = vsyncpa [#allocation12], 1 }
0x18eb   :  { %1667 = vsyncpa [#allocation4], 1 }

</bundles_post_ra>
